<compile_context>
chip_gen: v7x
topology: tpu7x:2x2x1
jax: 0.10.0
libtpu: 0.0.40
codegen_flags: <defaults>
</compile_context>

<pallas_src>
import numpy as np
import jax
import jax.numpy as jnp
from jax.experimental import pallas as pl
from jax.experimental.pallas import tpu as pltpu

# Operand dtype for the MXU matmuls (accumulation is always f32).
MXU_DTYPE = jnp.bfloat16


# ---------------------------------------------------------------------------
# Fused kernel: 4 x (polyphase-packed conv+ReLU, single fused matmul) -> Linear -> sigmoid
# ---------------------------------------------------------------------------
def _disc_fused_kernel(x_ref,
                       w1_ref, b1_ref,
                       w2_ref, b2_ref,
                       w3_ref, b3_ref,
                       w4_ref, b4_ref,
                       wfc_ref, bfc_ref,
                       o_ref):
    layers = ((w1_ref, b1_ref), (w2_ref, b2_ref),
              (w3_ref, b3_ref), (w4_ref, b4_ref))
    bb = x_ref.shape[0]                               # batch items handled this grid step

    wfc = wfc_ref[...].astype(jnp.float32)            # (m, lanes) packed fc weight (hoisted)
    bias_fc = bfc_ref[...]                            # (1, 1)

    outs = []
    for item in range(bb):                            # small static unroll over the batch block
        a = x_ref[item].astype(jnp.float32)           # (m, P) packed raw input
        for w_ref, b_ref in layers:
            m_rows, lanes = a.shape
            zero_row = jnp.zeros((1, lanes), jnp.float32)
            # a_prev[r] = a[r-1]  (row 0 = zeros == left padding) -- pure in-register sublane shift.
            if m_rows > 1:
                a_prev = jnp.concatenate([zero_row, a[:-1, :]], axis=0)
            else:
                a_prev = zero_row
            # Fused G/H matmul: one dot with K = 2*lanes (lane concat is cheap).
            a_cat = jnp.concatenate([a, a_prev], axis=-1)
            acc = jnp.dot(a_cat.astype(w_ref.dtype), w_ref[...],
                          preferred_element_type=jnp.float32)
            a = jnp.maximum(acc + b_ref[...], 0.0)     # bias + ReLU in f32, lane-dense (m, N)

        # Linear(128 * L/16 -> 1): wfc is pre-permuted to the packed layout, so this is just an
        # elementwise product + reductions.  All f32.
        part = jnp.sum(a * wfc, axis=1, keepdims=True)              # (m, 1)
        logit = jnp.sum(part, axis=0, keepdims=True) + bias_fc      # (1, 1)
        # Numerically stable sigmoid.
        e = jnp.exp(-jnp.abs(logit))
        sig = jnp.where(logit >= 0.0, 1.0 / (1.0 + e), e / (1.0 + e))
        outs.append(sig)

    o_ref[0] = jnp.concatenate(outs, axis=1)           # one (1, BB) lane write per grid step


# ---------------------------------------------------------------------------
# Host-side (init time) weight packing into the fused polyphase block-matmul form
# ---------------------------------------------------------------------------
def _pack_conv_layer(w, b, phases_in, mxu_dtype):
    """w: (Cout, Cin, 3) PyTorch Conv1d weight, b: (Cout,).

    Returns (W, b_tiled) with W = vstack([G, H]) of shape (2*p*Cin, (p//2)*Cout) such that
        out_packed = relu(concat([A, A_shift], -1) @ W + b_tiled)
    where A_shift[m] = A[m-1] (zeros for m == 0).  Tap k multiplies x[2t + k - 1] (padding=1);
    the H half carries only the tap0 term of the first output slot of each packed row, which
    reads the LAST input slot of the PREVIOUS packed row (hence the row shift).
    """
    w = np.asarray(w, np.float32)
    b = np.asarray(b, np.float32)
    cout, cin, _ = w.shape
    p = phases_in
    r_out = p // 2
    k_dim, n_dim = p * cin, r_out * cout
    w0, w1, w2 = (w[:, :, k].T for k in range(3))          # each (Cin, Cout)

    g = np.zeros((k_dim, n_dim), np.float32)
    h = np.zeros((k_dim, n_dim), np.float32)
    for r in range(r_out):
        cols = slice(r * cout, (r + 1) * cout)
        g[(2 * r) * cin:(2 * r + 1) * cin, cols] = w1       # x[2t]
        g[(2 * r + 1) * cin:(2 * r + 2) * cin, cols] = w2   # x[2t + 1]
        if r > 0:
            g[(2 * r - 1) * cin:(2 * r) * cin, cols] = w0   # x[2t - 1], same packed row
    h[(p - 1) * cin:, :cout] = w0                           # x[2t - 1] from previous packed row

    w_cat = np.vstack([g, h])                               # (2*k_dim, n_dim): one fused matmul
    b_tiled = np.tile(b, r_out).reshape(1, n_dim)
    return (jnp.asarray(w_cat, dtype=mxu_dtype),
            jnp.asarray(b_tiled, dtype=jnp.float32))


def pack_params(params, input_size, mxu_dtype=MXU_DTYPE):
    """Pack raw (PyTorch-layout) params into the fused kernel's layout.  Done once at init."""
    assert input_size % 16 == 0, "input length must be divisible by 16 (as the PyTorch fc requires)"
    phases0 = 32 if input_size % 32 == 0 else 16            # 32-phase packing => N=256 matmuls
    m = input_size // phases0

    convs = []
    phases = phases0
    for w, b in params["convs"]:
        convs.append(_pack_conv_layer(w, b, phases, mxu_dtype))
        phases //= 2

    # fc.weight is (1, 128 * L/16) over a channel-major flatten of (128, L/16).  Permute it once
    # into the packed layout: row = packed row m, lane = slot r * 128 + channel c, t = m*R + r.
    r_fc = phases0 // 16
    n_t = input_size // 16
    fc_mat = np.asarray(params["fc_w"], np.float32).reshape(128, n_t)   # [c, t]
    wfc = np.zeros((m, r_fc * 128), np.float32)
    for r in range(r_fc):
        wfc[:, r * 128:(r + 1) * 128] = fc_mat[:, r::r_fc].T
    bfc = np.asarray(params["fc_b"], np.float32).reshape(1, 1)
    return {"convs": convs,
            "wfc": jnp.asarray(wfc, mxu_dtype),
            "bfc": jnp.asarray(bfc, jnp.float32)}


# ---------------------------------------------------------------------------
# Forward pass: one pallas_call for the whole network
# ---------------------------------------------------------------------------
@jax.jit
def discriminator_forward(x_ncw, packed):
    """x_ncw: (B, 1, L) float32 NCW input (as in the PyTorch module).  Returns (B, 1)."""
    b_sz, c_in, length = x_ncw.shape
    m = packed["wfc"].shape[0]                      # packed rows (static)
    phases = length // m
    assert c_in == 1 and m * phases == length, (c_in, length, m)

    # bf16 polyphase-packed input: halves the only per-step HBM input DMA.
    x_packed = x_ncw.reshape(b_sz, m, phases).astype(MXU_DTYPE)

    # Batch blocking: up to 4 items per grid step (amortizes per-step grid overhead).
    bb = 1
    for cand in range(1, min(b_sz, 4) + 1):
        if b_sz % cand == 0:
            bb = cand
    n_blk = b_sz // bb

    def const_spec(arr):                            # weights: VMEM-resident, revisited each step
        return pl.BlockSpec(arr.shape, lambda b: (0,) * arr.ndim)

    in_specs = [pl.BlockSpec((bb, m, phases), lambda b: (b, 0, 0))]
    args = [x_packed]
    for w, bt in packed["convs"]:
        in_specs += [const_spec(w), const_spec(bt)]
        args += [w, bt]
    in_specs += [const_spec(packed["wfc"]), const_spec(packed["bfc"])]
    args += [packed["wfc"], packed["bfc"]]

    out = pl.pallas_call(
        _disc_fused_kernel,
        out_shape=jax.ShapeDtypeStruct((n_blk, 1, bb), jnp.float32),
        grid=(n_blk,),
        in_specs=in_specs,
        out_specs=pl.BlockSpec((1, 1, bb), lambda b: (b, 0, 0)),
        compiler_params=pltpu.CompilerParams(
            dimension_semantics=("parallel",),      # shard batch-blocks over TensorCores (v7x)
            vmem_limit_bytes=32 * 1024 * 1024,      # safe on v5e/v6e/v7x; usage is a few MiB
        ),
    )(*args)
    return out.reshape(b_sz, 1)


# ---------------------------------------------------------------------------
# Deterministic synthetic parameters (shapes from Discriminator.__init__) + f32 reference
# ---------------------------------------------------------------------------
def init_params(key, input_size):
    conv_specs = [(16, 1), (32, 16), (64, 32), (128, 64)]        # (out_ch, in_ch), k=3 each
    convs = []
    for i, (co, ci) in enumerate(conv_specs):
        kw, kb = jax.random.split(jax.random.fold_in(key, i))
        w = jax.random.normal(kw, (co, ci, 3), jnp.float32) * (1.0 / jnp.sqrt(ci * 3.0))
        b = jax.random.normal(kb, (co,), jnp.float32) * 0.01
        convs.append((w, b))
    d = 128 * (input_size // 16)
    kw, kb = jax.random.split(jax.random.fold_in(key, 100))
    fc_w = jax.random.normal(kw, (1, d), jnp.float32) * (1.0 / jnp.sqrt(float(d)))
    fc_b = jax.random.normal(kb, (1,), jnp.float32) * 0.01
    return {"convs": convs, "fc_w": fc_w, "fc_b": fc_b}


def _reference_forward(x_ncw, params):
    """Pure-XLA f32 reference of the PyTorch forward (for self-validation)."""
    h = x_ncw.astype(jnp.float32)
    for w, b in params["convs"]:
        h = jax.lax.conv_general_dilated(
            h, w, window_strides=(2,), padding=((1, 1),),
            dimension_numbers=("NCH", "OIH", "NCH"))
        h = jnp.maximum(h + b[None, :, None], 0.0)
    flat = h.reshape(h.shape[0], -1)                 # nn.Flatten on NCW -> channel-major
    logit = flat @ params["fc_w"].T + params["fc_b"]
    return jax.nn.sigmoid(logit)


if __name__ == "__main__":
    input_size = 256          # small stand-in for the real 16000; divisible by 32
    batch = 2
    key = jax.random.PRNGKey(0)
    kx, kp = jax.random.split(key)
    x = jax.random.normal(kx, (batch, 1, input_size), jnp.float32)   # (B, 1, L) NCW
    params = init_params(kp, input_size)
    packed = pack_params(params, input_size)

    y = discriminator_forward(x, packed)
    y = jax.block_until_ready(y)

    assert y.shape == (batch, 1), y.shape
    assert bool(jnp.all(jnp.isfinite(y)))
    assert bool(jnp.all((y >= 0.0) & (y <= 1.0)))

    # Cross-check against the f32 XLA reference (bf16 MXU operands => loose tolerance).
    y_ref = _reference_forward(x, params)
    err = float(jnp.max(jnp.abs(y - y_ref)))
    assert err < 5e-2, f"kernel deviates from f32 reference by {err}"
    print("KERNEL_OK")
</pallas_src>

<mosaic_0001>
module attributes {stable_mosaic.version = 11 : i64} {
  func.func @_disc_fused_kernel(%arg0: i32, %arg1: memref<2x8x32xbf16, #tpu.memory_space<vmem>>, %arg2: memref<64x256xbf16, #tpu.memory_space<vmem>>, %arg3: memref<1x256xf32, #tpu.memory_space<vmem>>, %arg4: memref<512x256xbf16, #tpu.memory_space<vmem>>, %arg5: memref<1x256xf32, #tpu.memory_space<vmem>>, %arg6: memref<512x256xbf16, #tpu.memory_space<vmem>>, %arg7: memref<1x256xf32, #tpu.memory_space<vmem>>, %arg8: memref<512x256xbf16, #tpu.memory_space<vmem>>, %arg9: memref<1x256xf32, #tpu.memory_space<vmem>>, %arg10: memref<8x256xbf16, #tpu.memory_space<vmem>>, %arg11: memref<1x1xf32, #tpu.memory_space<vmem>>, %arg12: memref<1x1x2xf32, #tpu.memory_space<vmem>>) attributes {dimension_semantics = [#tpu.dimension_semantics<parallel>], iteration_bounds = array<i64: 1>, scalar_prefetch = 0 : i64, scratch_operands = 0 : i64, tpu.core_type = #tpu.core_type<tc>, window_params = [{transform_indices = @transform_0, window_bounds = array<i64: 2, 8, 32>}, {pipeline_mode = #tpu.pipeline_mode<synchronous>, transform_indices = @transform_1, window_bounds = array<i64: 64, 256>}, {pipeline_mode = #tpu.pipeline_mode<synchronous>, transform_indices = @transform_2, window_bounds = array<i64: 1, 256>}, {pipeline_mode = #tpu.pipeline_mode<synchronous>, transform_indices = @transform_3, window_bounds = array<i64: 512, 256>}, {pipeline_mode = #tpu.pipeline_mode<synchronous>, transform_indices = @transform_4, window_bounds = array<i64: 1, 256>}, {pipeline_mode = #tpu.pipeline_mode<synchronous>, transform_indices = @transform_5, window_bounds = array<i64: 512, 256>}, {pipeline_mode = #tpu.pipeline_mode<synchronous>, transform_indices = @transform_6, window_bounds = array<i64: 1, 256>}, {pipeline_mode = #tpu.pipeline_mode<synchronous>, transform_indices = @transform_7, window_bounds = array<i64: 512, 256>}, {pipeline_mode = #tpu.pipeline_mode<synchronous>, transform_indices = @transform_8, window_bounds = array<i64: 1, 256>}, {pipeline_mode = #tpu.pipeline_mode<synchronous>, transform_indices = @transform_9, window_bounds = array<i64: 8, 256>}, {pipeline_mode = #tpu.pipeline_mode<synchronous>, transform_indices = @transform_10, window_bounds = array<i64: 1, 1>}, {transform_indices = @transform_11, window_bounds = array<i64: 1, 1, 2>}]} {
    %c0 = arith.constant 0 : index
    %c0_0 = arith.constant 0 : index
    %0 = vector.load %arg10[%c0, %c0_0] : memref<8x256xbf16, #tpu.memory_space<vmem>>, vector<8x256xbf16>
    %1 = arith.extf %0 : vector<8x256xbf16> to vector<8x256xf32>
    %c0_1 = arith.constant 0 : index
    %c0_2 = arith.constant 0 : index
    %2 = vector.load %arg11[%c0_1, %c0_2] : memref<1x1xf32, #tpu.memory_space<vmem>>, vector<1x1xf32>
    %c0_3 = arith.constant 0 : index
    %c0_4 = arith.constant 0 : index
    %c0_5 = arith.constant 0 : index
    %3 = vector.load %arg1[%c0_3, %c0_4, %c0_5] : memref<2x8x32xbf16, #tpu.memory_space<vmem>>, vector<1x8x32xbf16>
    %4 = vector.shape_cast %3 : vector<1x8x32xbf16> to vector<8x32xbf16>
    %5 = arith.extf %4 : vector<8x32xbf16> to vector<8x32xf32>
    %cst = arith.constant 0.000000e+00 : f32
    %6 = vector.broadcast %cst : f32 to vector<1x32xf32>
    %7 = vector.extract_strided_slice %5 {offsets = [0, 0], sizes = [7, 32], strides = [1, 1]} : vector<8x32xf32> to vector<7x32xf32>
    %8 = tpu.concatenate %6, %7 in 0 : vector<1x32xf32>, vector<7x32xf32> -> vector<8x32xf32>
    %9 = tpu.concatenate %5, %8 in 1 : vector<8x32xf32>, vector<8x32xf32> -> vector<8x64xf32>
    %10 = arith.truncf %9 : vector<8x64xf32> to vector<8x64xbf16>
    %c0_6 = arith.constant 0 : index
    %c0_7 = arith.constant 0 : index
    %11 = vector.load %arg2[%c0_6, %c0_7] : memref<64x256xbf16, #tpu.memory_space<vmem>>, vector<64x256xbf16>
    %cst_8 = arith.constant dense<0.000000e+00> : vector<8x256xf32>
    %12 = tpu.matmul %10, %11, %cst_8 {dimension_numbers = #tpu.dot_dimension_numbers<[1], [0], [0], [1], [0, 0, 1, 1], [], []>} : vector<8x64xbf16>, vector<64x256xbf16>, vector<8x256xf32> -> vector<8x256xf32>
    %c0_9 = arith.constant 0 : index
    %c0_10 = arith.constant 0 : index
    %13 = vector.load %arg3[%c0_9, %c0_10] : memref<1x256xf32, #tpu.memory_space<vmem>>, vector<1x256xf32>
    %14 = vector.broadcast %13 : vector<1x256xf32> to vector<8x256xf32>
    %15 = arith.addf %12, %14 : vector<8x256xf32>
    %cst_11 = arith.constant 0.000000e+00 : f32
    %16 = vector.broadcast %cst_11 : f32 to vector<8x256xf32>
    %17 = arith.maximumf %15, %16 : vector<8x256xf32>
    %cst_12 = arith.constant 0.000000e+00 : f32
    %18 = vector.broadcast %cst_12 : f32 to vector<1x256xf32>
    %19 = vector.extract_strided_slice %17 {offsets = [0, 0], sizes = [7, 256], strides = [1, 1]} : vector<8x256xf32> to vector<7x256xf32>
    %20 = tpu.concatenate %18, %19 in 0 : vector<1x256xf32>, vector<7x256xf32> -> vector<8x256xf32>
    %21 = tpu.concatenate %17, %20 in 1 : vector<8x256xf32>, vector<8x256xf32> -> vector<8x512xf32>
    %22 = arith.truncf %21 : vector<8x512xf32> to vector<8x512xbf16>
    %c0_13 = arith.constant 0 : index
    %c0_14 = arith.constant 0 : index
    %23 = vector.load %arg4[%c0_13, %c0_14] : memref<512x256xbf16, #tpu.memory_space<vmem>>, vector<512x256xbf16>
    %cst_15 = arith.constant dense<0.000000e+00> : vector<8x256xf32>
    %24 = tpu.matmul %22, %23, %cst_15 {dimension_numbers = #tpu.dot_dimension_numbers<[1], [0], [0], [1], [0, 0, 1, 1], [], []>} : vector<8x512xbf16>, vector<512x256xbf16>, vector<8x256xf32> -> vector<8x256xf32>
    %c0_16 = arith.constant 0 : index
    %c0_17 = arith.constant 0 : index
    %25 = vector.load %arg5[%c0_16, %c0_17] : memref<1x256xf32, #tpu.memory_space<vmem>>, vector<1x256xf32>
    %26 = vector.broadcast %25 : vector<1x256xf32> to vector<8x256xf32>
    %27 = arith.addf %24, %26 : vector<8x256xf32>
    %cst_18 = arith.constant 0.000000e+00 : f32
    %28 = vector.broadcast %cst_18 : f32 to vector<8x256xf32>
    %29 = arith.maximumf %27, %28 : vector<8x256xf32>
    %cst_19 = arith.constant 0.000000e+00 : f32
    %30 = vector.broadcast %cst_19 : f32 to vector<1x256xf32>
    %31 = vector.extract_strided_slice %29 {offsets = [0, 0], sizes = [7, 256], strides = [1, 1]} : vector<8x256xf32> to vector<7x256xf32>
    %32 = tpu.concatenate %30, %31 in 0 : vector<1x256xf32>, vector<7x256xf32> -> vector<8x256xf32>
    %33 = tpu.concatenate %29, %32 in 1 : vector<8x256xf32>, vector<8x256xf32> -> vector<8x512xf32>
    %34 = arith.truncf %33 : vector<8x512xf32> to vector<8x512xbf16>
    %c0_20 = arith.constant 0 : index
    %c0_21 = arith.constant 0 : index
    %35 = vector.load %arg6[%c0_20, %c0_21] : memref<512x256xbf16, #tpu.memory_space<vmem>>, vector<512x256xbf16>
    %cst_22 = arith.constant dense<0.000000e+00> : vector<8x256xf32>
    %36 = tpu.matmul %34, %35, %cst_22 {dimension_numbers = #tpu.dot_dimension_numbers<[1], [0], [0], [1], [0, 0, 1, 1], [], []>} : vector<8x512xbf16>, vector<512x256xbf16>, vector<8x256xf32> -> vector<8x256xf32>
    %c0_23 = arith.constant 0 : index
    %c0_24 = arith.constant 0 : index
    %37 = vector.load %arg7[%c0_23, %c0_24] : memref<1x256xf32, #tpu.memory_space<vmem>>, vector<1x256xf32>
    %38 = vector.broadcast %37 : vector<1x256xf32> to vector<8x256xf32>
    %39 = arith.addf %36, %38 : vector<8x256xf32>
    %cst_25 = arith.constant 0.000000e+00 : f32
    %40 = vector.broadcast %cst_25 : f32 to vector<8x256xf32>
    %41 = arith.maximumf %39, %40 : vector<8x256xf32>
    %cst_26 = arith.constant 0.000000e+00 : f32
    %42 = vector.broadcast %cst_26 : f32 to vector<1x256xf32>
    %43 = vector.extract_strided_slice %41 {offsets = [0, 0], sizes = [7, 256], strides = [1, 1]} : vector<8x256xf32> to vector<7x256xf32>
    %44 = tpu.concatenate %42, %43 in 0 : vector<1x256xf32>, vector<7x256xf32> -> vector<8x256xf32>
    %45 = tpu.concatenate %41, %44 in 1 : vector<8x256xf32>, vector<8x256xf32> -> vector<8x512xf32>
    %46 = arith.truncf %45 : vector<8x512xf32> to vector<8x512xbf16>
    %c0_27 = arith.constant 0 : index
    %c0_28 = arith.constant 0 : index
    %47 = vector.load %arg8[%c0_27, %c0_28] : memref<512x256xbf16, #tpu.memory_space<vmem>>, vector<512x256xbf16>
    %cst_29 = arith.constant dense<0.000000e+00> : vector<8x256xf32>
    %48 = tpu.matmul %46, %47, %cst_29 {dimension_numbers = #tpu.dot_dimension_numbers<[1], [0], [0], [1], [0, 0, 1, 1], [], []>} : vector<8x512xbf16>, vector<512x256xbf16>, vector<8x256xf32> -> vector<8x256xf32>
    %c0_30 = arith.constant 0 : index
    %c0_31 = arith.constant 0 : index
    %49 = vector.load %arg9[%c0_30, %c0_31] : memref<1x256xf32, #tpu.memory_space<vmem>>, vector<1x256xf32>
    %50 = vector.broadcast %49 : vector<1x256xf32> to vector<8x256xf32>
    %51 = arith.addf %48, %50 : vector<8x256xf32>
    %cst_32 = arith.constant 0.000000e+00 : f32
    %52 = vector.broadcast %cst_32 : f32 to vector<8x256xf32>
    %53 = arith.maximumf %51, %52 : vector<8x256xf32>
    %54 = arith.mulf %53, %1 : vector<8x256xf32>
    %cst_33 = arith.constant dense<0.000000e+00> : vector<8xf32>
    %55 = vector.multi_reduction <add>, %54, %cst_33 [1] : vector<8x256xf32> to vector<8xf32>
    %56 = vector.shape_cast %55 : vector<8xf32> to vector<8x1xf32>
    %cst_34 = arith.constant dense<0.000000e+00> : vector<1xf32>
    %57 = vector.multi_reduction <add>, %56, %cst_34 [0] : vector<8x1xf32> to vector<1xf32>
    %58 = vector.shape_cast %57 : vector<1xf32> to vector<1x1xf32>
    %59 = arith.addf %58, %2 : vector<1x1xf32>
    %60 = math.absf %59 : vector<1x1xf32>
    %cst_35 = arith.constant 0.000000e+00 : f32
    %61 = vector.broadcast %cst_35 : f32 to vector<1x1xf32>
    %62 = arith.subf %61, %60 : vector<1x1xf32>
    %63 = math.exp %62 : vector<1x1xf32>
    %cst_36 = arith.constant 0.000000e+00 : f32
    %64 = vector.broadcast %cst_36 : f32 to vector<1x1xf32>
    %65 = arith.cmpf oge, %59, %64 : vector<1x1xf32>
    %cst_37 = arith.constant 1.000000e+00 : f32
    %66 = vector.broadcast %cst_37 : f32 to vector<1x1xf32>
    %67 = arith.addf %66, %63 : vector<1x1xf32>
    %cst_38 = arith.constant 1.000000e+00 : f32
    %68 = vector.broadcast %cst_38 : f32 to vector<1x1xf32>
    %69 = arith.divf %68, %67 : vector<1x1xf32>
    %cst_39 = arith.constant 1.000000e+00 : f32
    %70 = vector.broadcast %cst_39 : f32 to vector<1x1xf32>
    %71 = arith.addf %70, %63 : vector<1x1xf32>
    %72 = arith.divf %63, %71 : vector<1x1xf32>
    %73 = arith.select %65, %69, %72 : vector<1x1xi1>, vector<1x1xf32>
    %c1 = arith.constant 1 : index
    %c0_40 = arith.constant 0 : index
    %c0_41 = arith.constant 0 : index
    %74 = vector.load %arg1[%c1, %c0_40, %c0_41] : memref<2x8x32xbf16, #tpu.memory_space<vmem>>, vector<1x8x32xbf16>
    %75 = vector.shape_cast %74 : vector<1x8x32xbf16> to vector<8x32xbf16>
    %76 = arith.extf %75 : vector<8x32xbf16> to vector<8x32xf32>
    %cst_42 = arith.constant 0.000000e+00 : f32
    %77 = vector.broadcast %cst_42 : f32 to vector<1x32xf32>
    %78 = vector.extract_strided_slice %76 {offsets = [0, 0], sizes = [7, 32], strides = [1, 1]} : vector<8x32xf32> to vector<7x32xf32>
    %79 = tpu.concatenate %77, %78 in 0 : vector<1x32xf32>, vector<7x32xf32> -> vector<8x32xf32>
    %80 = tpu.concatenate %76, %79 in 1 : vector<8x32xf32>, vector<8x32xf32> -> vector<8x64xf32>
    %81 = arith.truncf %80 : vector<8x64xf32> to vector<8x64xbf16>
    %c0_43 = arith.constant 0 : index
    %c0_44 = arith.constant 0 : index
    %82 = vector.load %arg2[%c0_43, %c0_44] : memref<64x256xbf16, #tpu.memory_space<vmem>>, vector<64x256xbf16>
    %cst_45 = arith.constant dense<0.000000e+00> : vector<8x256xf32>
    %83 = tpu.matmul %81, %82, %cst_45 {dimension_numbers = #tpu.dot_dimension_numbers<[1], [0], [0], [1], [0, 0, 1, 1], [], []>} : vector<8x64xbf16>, vector<64x256xbf16>, vector<8x256xf32> -> vector<8x256xf32>
    %c0_46 = arith.constant 0 : index
    %c0_47 = arith.constant 0 : index
    %84 = vector.load %arg3[%c0_46, %c0_47] : memref<1x256xf32, #tpu.memory_space<vmem>>, vector<1x256xf32>
    %85 = vector.broadcast %84 : vector<1x256xf32> to vector<8x256xf32>
    %86 = arith.addf %83, %85 : vector<8x256xf32>
    %cst_48 = arith.constant 0.000000e+00 : f32
    %87 = vector.broadcast %cst_48 : f32 to vector<8x256xf32>
    %88 = arith.maximumf %86, %87 : vector<8x256xf32>
    %cst_49 = arith.constant 0.000000e+00 : f32
    %89 = vector.broadcast %cst_49 : f32 to vector<1x256xf32>
    %90 = vector.extract_strided_slice %88 {offsets = [0, 0], sizes = [7, 256], strides = [1, 1]} : vector<8x256xf32> to vector<7x256xf32>
    %91 = tpu.concatenate %89, %90 in 0 : vector<1x256xf32>, vector<7x256xf32> -> vector<8x256xf32>
    %92 = tpu.concatenate %88, %91 in 1 : vector<8x256xf32>, vector<8x256xf32> -> vector<8x512xf32>
    %93 = arith.truncf %92 : vector<8x512xf32> to vector<8x512xbf16>
    %c0_50 = arith.constant 0 : index
    %c0_51 = arith.constant 0 : index
    %94 = vector.load %arg4[%c0_50, %c0_51] : memref<512x256xbf16, #tpu.memory_space<vmem>>, vector<512x256xbf16>
    %cst_52 = arith.constant dense<0.000000e+00> : vector<8x256xf32>
    %95 = tpu.matmul %93, %94, %cst_52 {dimension_numbers = #tpu.dot_dimension_numbers<[1], [0], [0], [1], [0, 0, 1, 1], [], []>} : vector<8x512xbf16>, vector<512x256xbf16>, vector<8x256xf32> -> vector<8x256xf32>
    %c0_53 = arith.constant 0 : index
    %c0_54 = arith.constant 0 : index
    %96 = vector.load %arg5[%c0_53, %c0_54] : memref<1x256xf32, #tpu.memory_space<vmem>>, vector<1x256xf32>
    %97 = vector.broadcast %96 : vector<1x256xf32> to vector<8x256xf32>
    %98 = arith.addf %95, %97 : vector<8x256xf32>
    %cst_55 = arith.constant 0.000000e+00 : f32
    %99 = vector.broadcast %cst_55 : f32 to vector<8x256xf32>
    %100 = arith.maximumf %98, %99 : vector<8x256xf32>
    %cst_56 = arith.constant 0.000000e+00 : f32
    %101 = vector.broadcast %cst_56 : f32 to vector<1x256xf32>
    %102 = vector.extract_strided_slice %100 {offsets = [0, 0], sizes = [7, 256], strides = [1, 1]} : vector<8x256xf32> to vector<7x256xf32>
    %103 = tpu.concatenate %101, %102 in 0 : vector<1x256xf32>, vector<7x256xf32> -> vector<8x256xf32>
    %104 = tpu.concatenate %100, %103 in 1 : vector<8x256xf32>, vector<8x256xf32> -> vector<8x512xf32>
    %105 = arith.truncf %104 : vector<8x512xf32> to vector<8x512xbf16>
    %c0_57 = arith.constant 0 : index
    %c0_58 = arith.constant 0 : index
    %106 = vector.load %arg6[%c0_57, %c0_58] : memref<512x256xbf16, #tpu.memory_space<vmem>>, vector<512x256xbf16>
    %cst_59 = arith.constant dense<0.000000e+00> : vector<8x256xf32>
    %107 = tpu.matmul %105, %106, %cst_59 {dimension_numbers = #tpu.dot_dimension_numbers<[1], [0], [0], [1], [0, 0, 1, 1], [], []>} : vector<8x512xbf16>, vector<512x256xbf16>, vector<8x256xf32> -> vector<8x256xf32>
    %c0_60 = arith.constant 0 : index
    %c0_61 = arith.constant 0 : index
    %108 = vector.load %arg7[%c0_60, %c0_61] : memref<1x256xf32, #tpu.memory_space<vmem>>, vector<1x256xf32>
    %109 = vector.broadcast %108 : vector<1x256xf32> to vector<8x256xf32>
    %110 = arith.addf %107, %109 : vector<8x256xf32>
    %cst_62 = arith.constant 0.000000e+00 : f32
    %111 = vector.broadcast %cst_62 : f32 to vector<8x256xf32>
    %112 = arith.maximumf %110, %111 : vector<8x256xf32>
    %cst_63 = arith.constant 0.000000e+00 : f32
    %113 = vector.broadcast %cst_63 : f32 to vector<1x256xf32>
    %114 = vector.extract_strided_slice %112 {offsets = [0, 0], sizes = [7, 256], strides = [1, 1]} : vector<8x256xf32> to vector<7x256xf32>
    %115 = tpu.concatenate %113, %114 in 0 : vector<1x256xf32>, vector<7x256xf32> -> vector<8x256xf32>
    %116 = tpu.concatenate %112, %115 in 1 : vector<8x256xf32>, vector<8x256xf32> -> vector<8x512xf32>
    %117 = arith.truncf %116 : vector<8x512xf32> to vector<8x512xbf16>
    %c0_64 = arith.constant 0 : index
    %c0_65 = arith.constant 0 : index
    %118 = vector.load %arg8[%c0_64, %c0_65] : memref<512x256xbf16, #tpu.memory_space<vmem>>, vector<512x256xbf16>
    %cst_66 = arith.constant dense<0.000000e+00> : vector<8x256xf32>
    %119 = tpu.matmul %117, %118, %cst_66 {dimension_numbers = #tpu.dot_dimension_numbers<[1], [0], [0], [1], [0, 0, 1, 1], [], []>} : vector<8x512xbf16>, vector<512x256xbf16>, vector<8x256xf32> -> vector<8x256xf32>
    %c0_67 = arith.constant 0 : index
    %c0_68 = arith.constant 0 : index
    %120 = vector.load %arg9[%c0_67, %c0_68] : memref<1x256xf32, #tpu.memory_space<vmem>>, vector<1x256xf32>
    %121 = vector.broadcast %120 : vector<1x256xf32> to vector<8x256xf32>
    %122 = arith.addf %119, %121 : vector<8x256xf32>
    %cst_69 = arith.constant 0.000000e+00 : f32
    %123 = vector.broadcast %cst_69 : f32 to vector<8x256xf32>
    %124 = arith.maximumf %122, %123 : vector<8x256xf32>
    %125 = arith.mulf %124, %1 : vector<8x256xf32>
    %cst_70 = arith.constant dense<0.000000e+00> : vector<8xf32>
    %126 = vector.multi_reduction <add>, %125, %cst_70 [1] : vector<8x256xf32> to vector<8xf32>
    %127 = vector.shape_cast %126 : vector<8xf32> to vector<8x1xf32>
    %cst_71 = arith.constant dense<0.000000e+00> : vector<1xf32>
    %128 = vector.multi_reduction <add>, %127, %cst_71 [0] : vector<8x1xf32> to vector<1xf32>
    %129 = vector.shape_cast %128 : vector<1xf32> to vector<1x1xf32>
    %130 = arith.addf %129, %2 : vector<1x1xf32>
    %131 = math.absf %130 : vector<1x1xf32>
    %cst_72 = arith.constant 0.000000e+00 : f32
    %132 = vector.broadcast %cst_72 : f32 to vector<1x1xf32>
    %133 = arith.subf %132, %131 : vector<1x1xf32>
    %134 = math.exp %133 : vector<1x1xf32>
    %cst_73 = arith.constant 0.000000e+00 : f32
    %135 = vector.broadcast %cst_73 : f32 to vector<1x1xf32>
    %136 = arith.cmpf oge, %130, %135 : vector<1x1xf32>
    %cst_74 = arith.constant 1.000000e+00 : f32
    %137 = vector.broadcast %cst_74 : f32 to vector<1x1xf32>
    %138 = arith.addf %137, %134 : vector<1x1xf32>
    %cst_75 = arith.constant 1.000000e+00 : f32
    %139 = vector.broadcast %cst_75 : f32 to vector<1x1xf32>
    %140 = arith.divf %139, %138 : vector<1x1xf32>
    %cst_76 = arith.constant 1.000000e+00 : f32
    %141 = vector.broadcast %cst_76 : f32 to vector<1x1xf32>
    %142 = arith.addf %141, %134 : vector<1x1xf32>
    %143 = arith.divf %134, %142 : vector<1x1xf32>
    %144 = arith.select %136, %140, %143 : vector<1x1xi1>, vector<1x1xf32>
    %145 = tpu.concatenate %73, %144 in 1 : vector<1x1xf32>, vector<1x1xf32> -> vector<1x2xf32>
    %c0_77 = arith.constant 0 : index
    %c0_78 = arith.constant 0 : index
    %c0_79 = arith.constant 0 : index
    %146 = vector.load %arg12[%c0_77, %c0_78, %c0_79] : memref<1x1x2xf32, #tpu.memory_space<vmem>>, vector<1x1x2xf32>
    %147 = vector.shape_cast %146 : vector<1x1x2xf32> to vector<1x2xf32>
    %148 = vector.shape_cast %145 : vector<1x2xf32> to vector<1x1x2xf32>
    tpu.vector_store %arg12[%c0_77, %c0_78, %c0_79], %148 {strides = array<i32>} : memref<1x1x2xf32, #tpu.memory_space<vmem>>, vector<1x1x2xf32>,
    return
  }
  func.func @transform_0(%arg0: i32) -> (i32, i32, i32) {
    %c0_i32 = arith.constant 0 : i32
    %c0_i32_0 = arith.constant 0 : i32
    %c0_i32_1 = arith.constant 0 : i32
    return %arg0, %c0_i32, %c0_i32_0 : i32, i32, i32
  }
  func.func @transform_1(%arg0: i32) -> (i32, i32) {
    %c0_i32 = arith.constant 0 : i32
    %c0_i32_0 = arith.constant 0 : i32
    %c0_i32_1 = arith.constant 0 : i32
    return %c0_i32, %c0_i32_0 : i32, i32
  }
  func.func @transform_2(%arg0: i32) -> (i32, i32) {
    %c0_i32 = arith.constant 0 : i32
    %c0_i32_0 = arith.constant 0 : i32
    %c0_i32_1 = arith.constant 0 : i32
    return %c0_i32, %c0_i32_0 : i32, i32
  }
  func.func @transform_3(%arg0: i32) -> (i32, i32) {
    %c0_i32 = arith.constant 0 : i32
    %c0_i32_0 = arith.constant 0 : i32
    %c0_i32_1 = arith.constant 0 : i32
    return %c0_i32, %c0_i32_0 : i32, i32
  }
  func.func @transform_4(%arg0: i32) -> (i32, i32) {
    %c0_i32 = arith.constant 0 : i32
    %c0_i32_0 = arith.constant 0 : i32
    %c0_i32_1 = arith.constant 0 : i32
    return %c0_i32, %c0_i32_0 : i32, i32
  }
  func.func @transform_5(%arg0: i32) -> (i32, i32) {
    %c0_i32 = arith.constant 0 : i32
    %c0_i32_0 = arith.constant 0 : i32
    %c0_i32_1 = arith.constant 0 : i32
    return %c0_i32, %c0_i32_0 : i32, i32
  }
  func.func @transform_6(%arg0: i32) -> (i32, i32) {
    %c0_i32 = arith.constant 0 : i32
    %c0_i32_0 = arith.constant 0 : i32
    %c0_i32_1 = arith.constant 0 : i32
    return %c0_i32, %c0_i32_0 : i32, i32
  }
  func.func @transform_7(%arg0: i32) -> (i32, i32) {
    %c0_i32 = arith.constant 0 : i32
    %c0_i32_0 = arith.constant 0 : i32
    %c0_i32_1 = arith.constant 0 : i32
    return %c0_i32, %c0_i32_0 : i32, i32
  }
  func.func @transform_8(%arg0: i32) -> (i32, i32) {
    %c0_i32 = arith.constant 0 : i32
    %c0_i32_0 = arith.constant 0 : i32
    %c0_i32_1 = arith.constant 0 : i32
    return %c0_i32, %c0_i32_0 : i32, i32
  }
  func.func @transform_9(%arg0: i32) -> (i32, i32) {
    %c0_i32 = arith.constant 0 : i32
    %c0_i32_0 = arith.constant 0 : i32
    %c0_i32_1 = arith.constant 0 : i32
    return %c0_i32, %c0_i32_0 : i32, i32
  }
  func.func @transform_10(%arg0: i32) -> (i32, i32) {
    %c0_i32 = arith.constant 0 : i32
    %c0_i32_0 = arith.constant 0 : i32
    %c0_i32_1 = arith.constant 0 : i32
    return %c0_i32, %c0_i32_0 : i32, i32
  }
  func.func @transform_11(%arg0: i32) -> (i32, i32, i32) {
    %c0_i32 = arith.constant 0 : i32
    %c0_i32_0 = arith.constant 0 : i32
    %c0_i32_1 = arith.constant 0 : i32
    return %arg0, %c0_i32, %c0_i32_0 : i32, i32, i32
  }
}

</mosaic_0001>

<bundles_post_ra>
// kernel: discriminator_forward.1
= control target key start
LH: loop header
LB: loop body
LE: loop exit
PB: predicated region body
PF: predicated region fallthrough
CT: control target
= control target key end

     0   :  { %s3932_s0 = inlined_call_operand.vmem [shape: bf16[2,8,32], index: 0, kind: input, shape index: {}]   ;;  %s3933_s1 = inlined_call_operand.hbm [shape: bf16[64,256], index: 1, kind: input, shape index: {}]   ;;  %s3934_s2 = inlined_call_operand.vmem [shape: f32[1,256], index: 2, kind: input, shape index: {}]   ;;  %s3935_s3 = inlined_call_operand.hbm [shape: bf16[512,256], index: 3, kind: input, shape index: {}]   ;;  %s3936_s4 = inlined_call_operand.vmem [shape: f32[1,256], index: 4, kind: input, shape index: {}]   ;;  %s3937_s5 = inlined_call_operand.hbm [shape: bf16[512,256], index: 5, kind: input, shape index: {}]   ;;  %s3938_s6 = inlined_call_operand.vmem [shape: f32[1,256], index: 6, kind: input, shape index: {}]   ;;  %s3939_s7 = inlined_call_operand.hbm [shape: bf16[512,256], index: 7, kind: input, shape index: {}]   ;;  %s3940_s8 = inlined_call_operand.vmem [shape: f32[1,256], index: 8, kind: input, shape index: {}]   ;;  %s3941_s9 = inlined_call_operand.vmem [shape: bf16[8,256], index: 9, kind: input, shape index: {}]   ;;  %s3942_s10 = inlined_call_operand.<no memory space> [shape: f32[1,1], index: 10, kind: input, shape index: {}]   ;;  %s3943_s11 = inlined_call_operand.hbm [shape: f32[1,1,2], index: 11, kind: output, shape index: {}]  }
   0x1   :  { %v16_v0 = vstv %s3942_s10 }
   0x2   :  { %17 = vst [vmem:[#allocation2] sm:$0x1] %v16_v0 }
   0x3   :  { %18 = vsyncpa [#allocation4], 0 }
   0x4   :  { %19 = vsyncpa [#allocation7], 0 }
   0x5   :  { %20 = vsyncpa [#allocation10], 0 }
   0x6   :  { %21 = vsyncpa [#allocation5], 0  ;;  %s2862_s19 = smov [#allocation6]   ;;  %s2863_s21 = smov [#allocation3]  }
   0x7   :  { %s43_s20 = sshll.u32 %s2862_s19, 4  ;;  %s29_s22 = sshll.u32 %s2863_s21, 4  ;;  %s44_s20 = int_to_ptr.vmem [resolvable:$true] %s43_s20  ;;  %s2935_s22 = int_to_ptr.vmem [resolvable:$true] %s29_s22 }
   0x8   :  { %s2744_s25 = scalar_lea.hbm %s3935_s3, 8192 }
   0x9   :  { %p2745_p0 = scmp.ne.s32.totalorder %s3935_s3, %s2744_s25  ;;  %p2748_p1 = scmp.lt.u32.totalorder %s2744_s25, %s3935_s3 }
   0xb   :  { %p2750_p2 = pnand %p2748_p1, %p2745_p0 }
   0xd   :  { %2753 = shalt.err (!%p2750_p2)
}
   0xe   :  { %s2754_s29 = scalar_lea.vmem %s44_s20, 8192  ;;  %p2759_p4 = scmp.lt.s32.totalorder %s44_s20, %s44_s20 }
   0xf   :  { %p2755_p3 = scmp.ne.s32.totalorder %s44_s20, %s2754_s29  ;;  %p2760_p5 = scmp.lt.s32.totalorder %s2754_s29, %s2754_s29 }
  0x11   :  { %p2761_p6 = por %p2760_p5, %p2759_p4 }
  0x13   :  { %p2762_p7 = pnand %p2761_p6, %p2755_p3 }
  0x15   :  { %2765 = shalt.err (!%p2762_p7)
}
  0x16   :  { %s2864_s30 = smov 128   ;;  %s2865_s12 = smov 8  }
  0x17   :  { %49 = dma.hbm_to_vmem [thread:$0]  %s3935_s3, 8192, %s44_s20, [#allocation7], %s2864_s30, %s2864_s30, %s2865_s12  }
  0x18   :  { %s2766_s17 = scalar_lea.hbm %s3933_s1, 1024 }
  0x19   :  { %p2767_p8 = scmp.ne.s32.totalorder %s3933_s1, %s2766_s17  ;;  %p2770_p9 = scmp.lt.u32.totalorder %s2766_s17, %s3933_s1 }
  0x1b   :  { %p2772_p10 = pnand %p2770_p9, %p2767_p8 }
  0x1d   :  { %2775 = shalt.err (!%p2772_p10)
}
  0x1e   :  { %s2776_s24 = scalar_lea.vmem %s2935_s22, 1024  ;;  %p2781_p12 = scmp.lt.s32.totalorder %s2935_s22, %s2935_s22 }
  0x1f   :  { %p2777_p11 = scmp.ne.s32.totalorder %s2935_s22, %s2776_s24  ;;  %p2782_p13 = scmp.lt.s32.totalorder %s2776_s24, %s2776_s24 }
  0x21   :  { %p2783_p0 = por %p2782_p13, %p2781_p12 }
  0x23   :  { %p2784_p1 = pnand %p2783_p0, %p2777_p11 }
  0x25   :  { %2787 = shalt.err (!%p2784_p1)
}
  0x26   :  { %35 = dma.hbm_to_vmem [thread:$0]  %s3933_s1, 1024, %s2935_s22, [#allocation4], %s2864_s30, %s2864_s30, %s2865_s12  }
  0x27   :  { %s2866_s25 = smov [#allocation8]   ;;  %s2867_s27 = smov [#allocation9]  }
  0x28   :  { %s57_s26 = sshll.u32 %s2866_s25, 4  ;;  %s71_s10 = sshll.u32 %s2867_s27, 4  ;;  %s58_s26 = int_to_ptr.vmem [resolvable:$true] %s57_s26  ;;  %s2972_s10 = int_to_ptr.vmem [resolvable:$true] %s71_s10 }
  0x29   :  { %s2788_s13 = scalar_lea.hbm %s3937_s5, 8192 }
  0x2a   :  { %p2789_p2 = scmp.ne.s32.totalorder %s3937_s5, %s2788_s13  ;;  %p2792_p3 = scmp.lt.u32.totalorder %s2788_s13, %s3937_s5 }
  0x2c   :  { %p2794_p4 = pnand %p2792_p3, %p2789_p2 }
  0x2e   :  { %2797 = shalt.err (!%p2794_p4)
}
  0x2f   :  { %s2798_s1 = scalar_lea.vmem %s58_s26, 8192  ;;  %p2803_p6 = scmp.lt.s32.totalorder %s58_s26, %s58_s26 }
  0x30   :  { %p2799_p5 = scmp.ne.s32.totalorder %s58_s26, %s2798_s1  ;;  %p2804_p7 = scmp.lt.s32.totalorder %s2798_s1, %s2798_s1 }
  0x32   :  { %p2805_p8 = por %p2804_p7, %p2803_p6 }
  0x34   :  { %p2806_p9 = pnand %p2805_p8, %p2799_p5 }
  0x36   :  { %2809 = shalt.err (!%p2806_p9)
}
  0x37   :  { %63 = dma.hbm_to_vmem [thread:$0]  %s3937_s5, 8192, %s58_s26, [#allocation7], %s2864_s30, %s2864_s30, %s2865_s12  }
  0x38   :  { %s2810_s23 = scalar_lea.hbm %s3939_s7, 8192 }
  0x39   :  { %p2811_p10 = scmp.ne.s32.totalorder %s3939_s7, %s2810_s23  ;;  %p2814_p11 = scmp.lt.u32.totalorder %s2810_s23, %s3939_s7 }
  0x3b   :  { %p2816_p12 = pnand %p2814_p11, %p2811_p10 }
  0x3d   :  { %2819 = shalt.err (!%p2816_p12)
}
  0x3e   :  { %s2820_s27 = scalar_lea.vmem %s2972_s10, 8192  ;;  %p2825_p0 = scmp.lt.s32.totalorder %s2972_s10, %s2972_s10 }
  0x3f   :  { %p2821_p13 = scmp.ne.s32.totalorder %s2972_s10, %s2820_s27  ;;  %p2826_p1 = scmp.lt.s32.totalorder %s2820_s27, %s2820_s27 }
  0x41   :  { %p2827_p2 = por %p2826_p1, %p2825_p0 }
  0x43   :  { %p2828_p3 = pnand %p2827_p2, %p2821_p13 }
  0x45   :  { %2831 = shalt.err (!%p2828_p3)
}
  0x46   :  { %77 = dma.hbm_to_vmem [thread:$0]  %s3939_s7, 8192, %s2972_s10, [#allocation10], %s2864_s30, %s2864_s30, %s2865_s12  }
  0x47   :  { %2854 = dma.done.wait [#allocation4], 1024  }
  0x48   :  { %2855 = vsyncadd [#allocation4], 4294966272 }
  0x49   :  { %2856 = dma.done.wait [#allocation7], 16384  }
  0x4a   :  { %2857 = vsyncadd [#allocation7], 4294950912 }
  0x4b   :  { %2858 = dma.done.wait [#allocation10], 8192  }
  0x4c   :  { %2859 = vsyncadd [#allocation10], 4294959104  ;;  %v3945_v1 = vmov 0   ;;  %v101_v2 = vld [vmem:[%s3932_s0] sm:$0xf]  ;;  %vm106_vm0 = vcmask 1040384  }
  0x4d   :  { %211 = vmatprep.mubr.bf16.mxu1 %v3945_v1  ;;  %v102_v3 = vunpack.c.l.bf16 %v101_v2  ;;  %v2427_v4 = vld [vmem:[#allocation3 + $0x4] ss:$8 sps:$4 sm:$0xff]   ;;  %v2429_v5 = vld [vmem:[#allocation3] ss:$8 sps:$4 sm:$0xff]   ;;  %v2430_v6 = vld [vmem:[#allocation3 + $0x14] ss:$8 sps:$4 sm:$0xff]  }
  0x4e   :  { %179 = vmatprep.subr.bf16.mxu1 %v2427_v4  ;;  %v2432_v8 = vld [vmem:[#allocation3 + $0x10] ss:$8 sps:$4 sm:$0xff]   ;;  %v2433_v10 = vld [vmem:[#allocation3 + $0x24] ss:$8 sps:$4 sm:$0xff]   ;;  %s2869_s7 = smov 32   ;;  %vm112_vm1 = vcmask 261120   ;;  %vm2191_vm3 = vmneg %vm106_vm0 }
  0x4f   :  { %v104_v7 = vrot.slane %v102_v3, 7  ;;  %180 = vmatpush1.bf16.msra.mxu1 %v2429_v5  ;;  %v2435_v11 = vld [vmem:[#allocation3 + $0x20] ss:$8 sps:$4 sm:$0xff]   ;;  %v2436_v12 = vld [vmem:[#allocation3 + $0x34] ss:$8 sps:$4 sm:$0xff]   ;;  %vm175_vm2 = vcmask 523264   ;;  %vm3227_vm4 = vmpackc.low %vm2191_vm3, %vm2191_vm3 }
  0x50   :  { %181 = vmatprep.subr.bf16.mxu1 %v2430_v6  ;;  %v2438_v13 = vld [vmem:[#allocation3 + $0x30] ss:$8 sps:$4 sm:$0xff]   ;;  %v2441_v14 = vld [vmem:[#allocation6 + $0x4] ss:$8 sps:$4 sm:$0xff]   ;;  %v3016_v17 = vld [vmem:[#allocation6] ss:$8 sps:$4 sm:$0xff]  }
  0x51   :  { %v107_v9 = vsel %vm106_vm0, 0.0, %v104_v7  ;;  %v3018_v19 = vld [vmem:[#allocation6 + $0x14] ss:$8 sps:$4 sm:$0xff]   ;;  %v3022_v20 = vld [vmem:[#allocation6 + $0x10] ss:$8 sps:$4 sm:$0xff]   ;;  %vm2097_vm6 = vcmask 7168  }
  0x52   :  { %109 = vrot.lane.b32.xlu0 %v107_v9, %s2869_s7  ;;  %v3025_v21 = vld [vmem:[#allocation6 + $0x24] ss:$8 sps:$4 sm:$0xff]   ;;  %v3028_v22 = vld [vmem:[#allocation6 + $0x20] ss:$8 sps:$4 sm:$0xff]   ;;  %v3031_v23 = vld [vmem:[#allocation6 + $0x34] ss:$8 sps:$4 sm:$0xff]  }
  0x53   :  { %182 = vmatpush1.bf16.msra.mxu1 %v2432_v8  ;;  %v3034_v24 = vld [vmem:[#allocation6 + $0x30] ss:$8 sps:$4 sm:$0xff]   ;;  %v3037_v25 = vld [vmem:[#allocation6 + $0x44] ss:$8 sps:$4 sm:$0xff]   ;;  %v3040_v26 = vld [vmem:[#allocation6 + $0x40] ss:$8 sps:$4 sm:$0xff]  }
  0x54   :  { %183 = vmatprep.subr.bf16.mxu1 %v2433_v10  ;;  %v3043_v27 = vld [vmem:[#allocation6 + $0x54] ss:$8 sps:$4 sm:$0xff]   ;;  %v3046_v28 = vld [vmem:[#allocation6 + $0x50] ss:$8 sps:$4 sm:$0xff]   ;;  %v3049_v29 = vld [vmem:[#allocation6 + $0x64] ss:$8 sps:$4 sm:$0xff]  }
  0x55   :  { %v3052_v30 = vld [vmem:[#allocation6 + $0x60] ss:$8 sps:$4 sm:$0xff]   ;;  %v3055_v31 = vld [vmem:[#allocation6 + $0x74] ss:$8 sps:$4 sm:$0xff]   ;;  %v3058_v32 = vld [vmem:[#allocation6 + $0x70] ss:$8 sps:$4 sm:$0xff]  }
  0x56   :  { %v3061_v33 = vld [vmem:[#allocation6 + $0x84] ss:$8 sps:$4 sm:$0xff]   ;;  %v3064_v34 = vld [vmem:[#allocation6 + $0x80] ss:$8 sps:$4 sm:$0xff]   ;;  %v3067_v35 = vld [vmem:[#allocation6 + $0x94] ss:$8 sps:$4 sm:$0xff]  }
  0x57   :  { %184 = vmatpush1.bf16.msra.mxu1 %v2435_v11  ;;  %v3070_v36 = vld [vmem:[#allocation6 + $0x90] ss:$8 sps:$4 sm:$0xff]   ;;  %v3073_v37 = vld [vmem:[#allocation6 + $0xa4] ss:$8 sps:$4 sm:$0xff]   ;;  %v3076_v38 = vld [vmem:[#allocation6 + $0xa0] ss:$8 sps:$4 sm:$0xff]  }
  0x58   :  { %185 = vmatprep.subr.bf16.mxu1 %v2436_v12  ;;  %v3079_v39 = vld [vmem:[#allocation6 + $0xb4] ss:$8 sps:$4 sm:$0xff]   ;;  %v3082_v40 = vld [vmem:[#allocation6 + $0xb0] ss:$8 sps:$4 sm:$0xff]   ;;  %v3085_v41 = vld [vmem:[#allocation6 + $0xc4] ss:$8 sps:$4 sm:$0xff]  }
  0x59   :  { %v3088_v42 = vld [vmem:[#allocation6 + $0xc0] ss:$8 sps:$4 sm:$0xff]   ;;  %v3091_v43 = vld [vmem:[#allocation6 + $0xd4] ss:$8 sps:$4 sm:$0xff]   ;;  %v3094_v44 = vld [vmem:[#allocation6 + $0xd0] ss:$8 sps:$4 sm:$0xff]  }
  0x5a   :  { %v3098_v45 = vld [vmem:[#allocation6 + $0xe4] ss:$8 sps:$4 sm:$0xff]   ;;  %v3100_v46 = vld [vmem:[#allocation6 + $0xe0] ss:$8 sps:$4 sm:$0xff]   ;;  %v3104_v47 = vld [vmem:[#allocation6 + $0xf4] ss:$8 sps:$4 sm:$0xff]  }
  0x5b   :  { %186 = vmatpush1.bf16.msra.mxu1 %v2438_v13  ;;  %v3106_v48 = vld [vmem:[#allocation6 + $0xf0] ss:$8 sps:$4 sm:$0xff]   ;;  %v3110_v49 = vld [vmem:[#allocation6 + $0x104] ss:$8 sps:$4 sm:$0xff]   ;;  %v3115_v51 = vld [vmem:[#allocation8] ss:$8 sps:$4 sm:$0xff]   ;;  %v125_v13 = vlaneseq }
  0x5c   :  { %630 = vmatprep.subr.bf16.mxu1 %v2441_v14  ;;  %v3113_v50 = vld [vmem:[#allocation8 + $0x4] ss:$8 sps:$4 sm:$0xff]   ;;  %4058 = vst [vmem:[#allocation17_spill] sm:$0xff] %v3115_v51  ;;  %v3117_v52 = vld [vmem:[#allocation8 + $0x14] ss:$8 sps:$4 sm:$0xff]   ;;  %vm2099_vm8 = vcmask 8192  }
  0x5d   :  { %4057 = vst [vmem:[#allocation16_spill] sm:$0xff] %v3113_v50  ;;  %4059 = vst [vmem:[#allocation18_spill] sm:$0xff] %v3117_v52  ;;  %1122 = vmatprep.subr.bf16.mxu0 %v3113_v50  ;;  %v3121_v53 = vld [vmem:[#allocation8 + $0x10] ss:$8 sps:$4 sm:$0xff]   ;;  %v3124_v54 = vld [vmem:[#allocation8 + $0x24] ss:$8 sps:$4 sm:$0xff]  }
  0x5e   :  { %1123 = vmatpush1.bf16.msra.mxu0 %v3115_v51  ;;  %4060 = vst [vmem:[#allocation19_spill] sm:$0xff] %v3121_v53  ;;  %4061 = vst [vmem:[#allocation20_spill] sm:$0xff] %v3124_v54  ;;  %v3129_v55 = vld [vmem:[%s3932_s0 + $0x4] sm:$0xf]  ;;  %v3138_v59 = vld [vmem:[#allocation8 + $0x34] ss:$8 sps:$4 sm:$0xff]  }
  0x5f   :  { %1124 = vmatprep.subr.bf16.mxu0 %v3117_v52  ;;  %v3944_v56 = vunpack.c.l.bf16 %v3129_v55  ;;  %v3133_v57 = vld [vmem:[#allocation8 + $0x20] ss:$8 sps:$4 sm:$0xff]   ;;  %4063 = vst [vmem:[#allocation22_spill] sm:$0xff] %v3138_v59  ;;  %v3143_v61 = vld [vmem:[#allocation8 + $0x30] ss:$8 sps:$4 sm:$0xff]  }
  0x60   :  { %4062 = vst [vmem:[#allocation21_spill] sm:$0xff] %v3133_v57  ;;  %4064 = vst [vmem:[#allocation23_spill] sm:$0xff] %v3143_v61  ;;  %v3146_v62 = vld [vmem:[#allocation8 + $0x44] ss:$8 sps:$4 sm:$0xff]   ;;  %v3149_v63 = vld [vmem:[#allocation8 + $0x40] ss:$8 sps:$4 sm:$0xff]  }
  0x61   :  { %v1724_v58 = vrot.slane %v3944_v56, 7  ;;  %4065 = vst [vmem:[#allocation24_spill] sm:$0xff] %v3146_v62  ;;  %4066 = vst [vmem:[#allocation25_spill] sm:$0xff] %v3149_v63  ;;  %v3152_v0 = vld [vmem:[#allocation8 + $0x54] ss:$8 sps:$4 sm:$0xff]  }
  0x62   :  { %1125 = vmatpush1.bf16.msra.mxu0 %v3121_v53  ;;  %4067 = vst [vmem:[#allocation26_spill] sm:$0xff] %v3152_v0  ;;  %v3155_v2 = vld [vmem:[#allocation8 + $0x50] ss:$8 sps:$4 sm:$0xff]   ;;  %v3161_v4 = vld [vmem:[#allocation8 + $0x60] ss:$8 sps:$4 sm:$0xff]  }
  0x63   :  { %1126 = vmatprep.subr.bf16.mxu0 %v3124_v54  ;;  %v1726_v60 = vsel %vm106_vm0, 0.0, %v1724_v58  ;;  %4068 = vst [vmem:[#allocation27_spill] sm:$0xff] %v3155_v2  ;;  %4070 = vst [vmem:[#allocation29_spill] sm:$0xff] %v3161_v4  ;;  %v3164_v5 = vld [vmem:[#allocation8 + $0x74] ss:$8 sps:$4 sm:$0xff]  }
  0x64   :  { %1728 = vrot.lane.b32.xlu0 %v1726_v60, %s2869_s7  ;;  %4071 = vst [vmem:[#allocation30_spill] sm:$0xff] %v3164_v5  ;;  %v3167_v6 = vld [vmem:[#allocation8 + $0x70] ss:$8 sps:$4 sm:$0xff]   ;;  %v3170_v7 = vld [vmem:[#allocation8 + $0x84] ss:$8 sps:$4 sm:$0xff]  }
  0x65   :  { %4072 = vst [vmem:[#allocation31_spill] sm:$0xff] %v3167_v6  ;;  %4073 = vst [vmem:[#allocation32_spill] sm:$0xff] %v3170_v7  ;;  %v3173_v8 = vld [vmem:[#allocation8 + $0x80] ss:$8 sps:$4 sm:$0xff]   ;;  %v3176_v9 = vld [vmem:[#allocation8 + $0x94] ss:$8 sps:$4 sm:$0xff]  }
  0x66   :  { %1127 = vmatpush1.bf16.msra.mxu0 %v3133_v57  ;;  %4074 = vst [vmem:[#allocation33_spill] sm:$0xff] %v3173_v8  ;;  %4075 = vst [vmem:[#allocation34_spill] sm:$0xff] %v3176_v9  ;;  %v3179_v10 = vld [vmem:[#allocation8 + $0x90] ss:$8 sps:$4 sm:$0xff]   ;;  %v3182_v11 = vld [vmem:[#allocation8 + $0xa4] ss:$8 sps:$4 sm:$0xff]  }
  0x67   :  { %1128 = vmatprep.subr.bf16.mxu0 %v3138_v59  ;;  %4076 = vst [vmem:[#allocation35_spill] sm:$0xff] %v3179_v10  ;;  %4077 = vst [vmem:[#allocation36_spill] sm:$0xff] %v3182_v11  ;;  %v3185_v12 = vld [vmem:[#allocation8 + $0xa0] ss:$8 sps:$4 sm:$0xff]   ;;  %v3188_v14 = vld [vmem:[#allocation8 + $0xb4] ss:$8 sps:$4 sm:$0xff]  }
  0x68   :  { %4078 = vst [vmem:[#allocation37_spill] sm:$0xff] %v3185_v12  ;;  %4079 = vst [vmem:[#allocation38_spill] sm:$0xff] %v3188_v14  ;;  %v3197_v58 = vld [vmem:[#allocation8 + $0xc0] ss:$8 sps:$4 sm:$0xff]   ;;  %v3202_v56 = vld [vmem:[#allocation8 + $0xd4] ss:$8 sps:$4 sm:$0xff]  }
  0x69   :  { %4082 = vst [vmem:[#allocation41_spill] sm:$0xff] %v3197_v58  ;;  %4083 = vst [vmem:[#allocation42_spill] sm:$0xff] %v3202_v56  ;;  %v123_v1 = vld [vmem:[%s3934_s2] sm:$0x3]  ;;  %v3286_v59 = vld [vmem:[#allocation6 + $0x190] ss:$8 sps:$4 sm:$0xff]  }
  0x6a   :  { %1129 = vmatpush1.bf16.msra.mxu0 %v3143_v61  ;;  %v3283_v61 = vld [vmem:[#allocation6 + $0x194] ss:$8 sps:$4 sm:$0xff]   ;;  %4094 = vst [vmem:[#allocation51_spill] sm:$0xff] %v3286_v59  ;;  %v3289_v57 = vld [vmem:[#allocation6 + $0x1a4] ss:$8 sps:$4 sm:$0xff]  }
  0x6b   :  { %1130 = vmatprep.subr.bf16.mxu0 %v3146_v62  ;;  %v3280_v62 = vld [vmem:[#allocation6 + $0x180] ss:$8 sps:$4 sm:$0xff]   ;;  %4093 = vst [vmem:[#allocation50_spill] sm:$0xff] %v3283_v61  ;;  %4095 = vst [vmem:[#allocation52_spill] sm:$0xff] %v3289_v57  ;;  %v3295_v53 = vld [vmem:[#allocation6 + $0x1b4] ss:$8 sps:$4 sm:$0xff]  }
  0x6c   :  { %4092 = vst [vmem:[#allocation49_spill] sm:$0xff] %v3280_v62  ;;  %v3292_v54 = vld [vmem:[#allocation6 + $0x1a0] ss:$8 sps:$4 sm:$0xff]   ;;  %4097 = vst [vmem:[#allocation54_spill] sm:$0xff] %v3295_v53  ;;  %v3298_v52 = vld [vmem:[#allocation6 + $0x1b0] ss:$8 sps:$4 sm:$0xff]  }
  0x6d   :  { %4096 = vst [vmem:[#allocation53_spill] sm:$0xff] %v3292_v54  ;;  %4098 = vst [vmem:[#allocation55_spill] sm:$0xff] %v3298_v52  ;;  %v3301_v51 = vld [vmem:[#allocation6 + $0x1c4] ss:$8 sps:$4 sm:$0xff]   ;;  %v3304_v50 = vld [vmem:[#allocation6 + $0x1c0] ss:$8 sps:$4 sm:$0xff]  }
  0x6e   :  { %1131 = vmatpush1.bf16.msra.mxu0 %v3149_v63  ;;  %v3277_v63 = vld [vmem:[#allocation6 + $0x184] ss:$8 sps:$4 sm:$0xff]   ;;  %4099 = vst [vmem:[#allocation56_spill] sm:$0xff] %v3301_v51  ;;  %4100 = vst [vmem:[#allocation57_spill] sm:$0xff] %v3304_v50 }
  0x6f   :  { %1132 = vmatprep.subr.bf16.mxu0 %v3152_v0  ;;  %v3274_v0 = vld [vmem:[#allocation6 + $0x170] ss:$8 sps:$4 sm:$0xff]   ;;  %4091 = vst [vmem:[#allocation48_spill] sm:$0xff] %v3277_v63 }
  0x70   :  { %4090 = vst [vmem:[#allocation47_spill] sm:$0xff] %v3274_v0 }
  0x72   :  { %1133 = vmatpush1.bf16.msra.mxu0 %v3155_v2  ;;  %v3271_v2 = vld [vmem:[#allocation6 + $0x174] ss:$8 sps:$4 sm:$0xff]  }
  0x73   :  { %4089 = vst [vmem:[#allocation46_spill] sm:$0xff] %v3271_v2 }
  0xc4   :  { %v110_v15 = vpop.permute.xlu0 %109 }
  0xc5   :  { %v113_v16 = vsel %vm112_vm1, %v102_v3, %v110_v15  ;;  %v3158_v3 = vld [vmem:[#allocation8 + $0x64] ss:$8 sps:$4 sm:$0xff]   ;;  %v3191_v15 = vld [vmem:[#allocation8 + $0xb0] ss:$8 sps:$4 sm:$0xff]  }
  0xc6   :  { %v114_v18 = vpack.c.bf16 %v113_v16, %v113_v16  ;;  %4069 = vst [vmem:[#allocation28_spill] sm:$0xff] %v3158_v3  ;;  %1134 = vmatprep.subr.bf16.mxu0 %v3158_v3  ;;  %4080 = vst [vmem:[#allocation39_spill] sm:$0xff] %v3191_v15  ;;  %v126_v16 = vshrl.u32 %v125_v13, 7  ;;  %v3210_v13 = vld [vmem:[#allocation8 + $0xd0] ss:$8 sps:$4 sm:$0xff]  }
  0xc7   :  { %1135 = vmatpush1.bf16.msra.mxu0 %v3161_v4  ;;  %4084 = vst [vmem:[#allocation43_spill] sm:$0xff] %v3210_v13  ;;  %v3265_v4 = vld [vmem:[#allocation6 + $0x164] ss:$8 sps:$4 sm:$0xff]   ;;  %v3268_v3 = vld [vmem:[#allocation6 + $0x160] ss:$8 sps:$4 sm:$0xff]  }
  0xc8   :  { %2126 = vmatmul.mubr.msk.bf16.vlgmr.msra.gmra.mrb[0].mxu1 %vm175_vm2, %v114_v18  ;;  %1136 = vmatprep.subr.bf16.mxu0 %v3164_v5  ;;  %v3194_v18 = vld [vmem:[#allocation8 + $0xc4] ss:$8 sps:$4 sm:$0xff]   ;;  %v3199_v60 = vsub.s32 0, %v126_v16  ;;  %v3225_v5 = vld [vmem:[#allocation6 + $0x100] ss:$8 sps:$4 sm:$0xff]   ;;  %4087 = vst [vmem:[#allocation44_spill] sm:$0xff] %v3265_v4 }
  0xc9   :  { %631 = vmatpush1.bf16.msra.mxu1 %v3016_v17  ;;  %4081 = vst [vmem:[#allocation40_spill] sm:$0xff] %v3194_v18  ;;  %4088 = vst [vmem:[#allocation45_spill] sm:$0xff] %v3268_v3 }
  0xca   :  { %632 = vmatprep.subr.bf16.mxu1 %v3018_v19 }
  0xcb   :  { %1137 = vmatpush1.bf16.msra.mxu0 %v3167_v6 }
  0xcc   :  { %1138 = vmatprep.subr.bf16.mxu0 %v3170_v7 }
  0xcd   :  { %633 = vmatpush1.bf16.msra.mxu1 %v3022_v20 }
  0xce   :  { %634 = vmatprep.subr.bf16.mxu1 %v3025_v21 }
  0xcf   :  { %1139 = vmatpush1.bf16.msra.mxu0 %v3173_v8 }
  0xd0   :  { %1140 = vmatprep.subr.bf16.mxu0 %v3176_v9 }
  0xd1   :  { %635 = vmatpush1.bf16.msra.mxu1 %v3028_v22 }
  0xd2   :  { %636 = vmatprep.subr.bf16.mxu1 %v3031_v23 }
  0xd3   :  { %1141 = vmatpush1.bf16.msra.mxu0 %v3179_v10 }
  0xd4   :  { %1142 = vmatprep.subr.bf16.mxu0 %v3182_v11 }
  0xd5   :  { %637 = vmatpush1.bf16.msra.mxu1 %v3034_v24 }
  0xd6   :  { %638 = vmatprep.subr.bf16.mxu1 %v3037_v25 }
  0xd7   :  { %1143 = vmatpush1.bf16.msra.mxu0 %v3185_v12  ;;  %v3207_v12 = vsub.s32 1, %v126_v16 }
  0xd8   :  { %1144 = vmatprep.subr.bf16.mxu0 %v3188_v14 }
  0xd9   :  { %639 = vmatpush1.bf16.msra.mxu1 %v3040_v26  ;;  %v3217_v14 = vrot.slane %v123_v1, %v3207_v12 }
  0xda   :  { %640 = vmatprep.subr.bf16.mxu1 %v3043_v27 }
  0xdb   :  { %1145 = vmatpush1.bf16.msra.mxu0 %v3191_v15  ;;  %v3213_v15 = vrot.slane %v123_v1, %v3199_v60 }
  0xdc   :  { %1146 = vmatprep.subr.bf16.mxu0 %v3194_v18 }
  0xdd   :  { %641 = vmatpush1.bf16.msra.mxu1 %v3046_v28 }
  0xde   :  { %642 = vmatprep.subr.bf16.mxu1 %v3049_v29 }
  0xdf   :  { %1147 = vmatpush1.bf16.msra.mxu0 %v3197_v58 }
  0xe0   :  { %1148 = vmatprep.subr.bf16.mxu0 %v3202_v56 }
  0xe1   :  { %643 = vmatpush1.bf16.msra.mxu1 %v3052_v30 }
  0xe2   :  { %644 = vmatprep.subr.bf16.mxu1 %v3055_v31 }
  0xe3   :  { %1149 = vmatpush1.bf16.msra.mxu0 %v3210_v13  ;;  %v3233_v13 = vld [vmem:[#allocation6 + $0x114] ss:$8 sps:$4 sm:$0xff]  }
  0xe5   :  { %645 = vmatpush1.bf16.msra.mxu1 %v3058_v32 }
  0xe6   :  { %646 = vmatprep.subr.bf16.mxu1 %v3061_v33 }
  0xe9   :  { %647 = vmatpush1.bf16.msra.mxu1 %v3064_v34 }
  0xea   :  { %648 = vmatprep.subr.bf16.mxu1 %v3067_v35 }
  0xed   :  { %649 = vmatpush1.bf16.msra.mxu1 %v3070_v36 }
  0xee   :  { %650 = vmatprep.subr.bf16.mxu1 %v3073_v37 }
  0xf1   :  { %651 = vmatpush1.bf16.msra.mxu1 %v3076_v38 }
  0xf2   :  { %652 = vmatprep.subr.bf16.mxu1 %v3079_v39 }
  0xf5   :  { %653 = vmatpush1.bf16.msra.mxu1 %v3082_v40 }
  0xf6   :  { %654 = vmatprep.subr.bf16.mxu1 %v3085_v41 }
  0xf9   :  { %655 = vmatpush1.bf16.msra.mxu1 %v3088_v42 }
  0xfa   :  { %656 = vmatprep.subr.bf16.mxu1 %v3091_v43 }
  0xfd   :  { %657 = vmatpush1.bf16.msra.mxu1 %v3094_v44 }
  0xfe   :  { %658 = vmatprep.subr.bf16.mxu1 %v3098_v45 }
 0x101   :  { %659 = vmatpush1.bf16.msra.mxu1 %v3100_v46 }
 0x102   :  { %660 = vmatprep.subr.bf16.mxu1 %v3104_v47 }
 0x105   :  { %661 = vmatpush1.bf16.msra.mxu1 %v3106_v48 }
 0x106   :  { %671 = vmatprep.subr.bf16.mxu1 %v3110_v49 }
 0x19b   :  { %v213_v18 = vpop.f32.mrb[0].mxu1 }
 0x19c   :  { %v214_v11 = vadd.f32 %v213_v18, %v3213_v15  ;;  %v215_v10 = vpop.f32.mrb[1].mxu1 }
 0x19d   :  { %v216_v16 = vadd.f32 %v215_v10, %v3217_v14  ;;  %v217_v9 = vpop.f32.mrb[2].mxu1  ;;  %v3244_v10 = vld [vmem:[#allocation6 + $0x120] ss:$8 sps:$4 sm:$0xff]  }
 0x19e   :  { %v3222_v58 = vmax.f32 %v214_v11, 0.0  ;;  %v218_v8 = vpop.f32.mrb[3].mxu1  ;;  %v3253_v11 = vld [vmem:[#allocation6 + $0x144] ss:$8 sps:$4 sm:$0xff]  }
 0x19f   :  { %v221_v7 = vmax.f32 %v216_v16, 0.0  ;;  %v3241_v8 = vld [vmem:[#allocation6 + $0x124] ss:$8 sps:$4 sm:$0xff]   ;;  %v3256_v16 = vld [vmem:[#allocation6 + $0x140] ss:$8 sps:$4 sm:$0xff]  }
 0x1a0   :  { %v230_v18 = vpack.c.bf16 %v3222_v58, %v3222_v58 }
 0x1a1   :  { %v225_v6 = vrot.slane %v221_v7, 7  ;;  %v231_v56 = vpack.c.bf16 %v221_v7, %v221_v7  ;;  %v3238_v7 = vld [vmem:[#allocation6 + $0x110] ss:$8 sps:$4 sm:$0xff]  }
 0x1a3   :  { %v2194_v9 = vpack.c.bf16 %v225_v6, %v225_v6  ;;  %662 = vmatprep.mubr.bf16.mxu1 %v231_v56  ;;  %v3247_v6 = vld [vmem:[#allocation6 + $0x134] ss:$8 sps:$4 sm:$0xff]   ;;  %v3250_v56 = vld [vmem:[#allocation6 + $0x130] ss:$8 sps:$4 sm:$0xff]  }
 0x1a4   :  { %663 = vmatmul.mubr.bf16.vlgmr.msra.gmra.mrb[4].mxu1 %v230_v18  ;;  %v3259_v18 = vld [vmem:[#allocation6 + $0x154] ss:$8 sps:$4 sm:$0xff]  }
 0x1a5   :  { %672 = vmatpush1.bf16.msra.mxu1 %v3225_v5  ;;  %2195 = vmatprep.mubr.msk.bf16.mxu1 %vm3227_vm4, %v2194_v9  ;;  %v3262_v9 = vld [vmem:[#allocation6 + $0x150] ss:$8 sps:$4 sm:$0xff]  }
 0x1a6   :  { %673 = vmatprep.subr.bf16.mxu1 %v3233_v13 }
 0x1a9   :  { %674 = vmatpush1.bf16.msra.mxu1 %v3238_v7 }
 0x1aa   :  { %675 = vmatprep.subr.bf16.mxu1 %v3241_v8 }
 0x1ad   :  { %676 = vmatpush1.bf16.msra.mxu1 %v3244_v10 }
 0x1ae   :  { %677 = vmatprep.subr.bf16.mxu1 %v3247_v6 }
 0x1b1   :  { %678 = vmatpush1.bf16.msra.mxu1 %v3250_v56 }
 0x1b2   :  { %679 = vmatprep.subr.bf16.mxu1 %v3253_v11 }
 0x1b5   :  { %680 = vmatpush1.bf16.msra.mxu1 %v3256_v16 }
 0x1b6   :  { %681 = vmatprep.subr.bf16.mxu1 %v3259_v18 }
 0x1b9   :  { %682 = vmatpush1.bf16.msra.mxu1 %v3262_v9 }
 0x1ba   :  { %683 = vmatprep.subr.bf16.mxu1 %v3265_v4  ;;  %v3425_v4 = vld [vmem:[#allocation9 + $0xb0] ss:$8 sps:$4 sm:$0xff]  }
 0x1bd   :  { %684 = vmatpush1.bf16.msra.mxu1 %v3268_v3 }
 0x1be   :  { %685 = vmatprep.subr.bf16.mxu1 %v3271_v2 }
 0x1c1   :  { %686 = vmatpush1.bf16.msra.mxu1 %v3274_v0 }
 0x1c2   :  { %687 = vmatprep.subr.bf16.mxu1 %v3277_v63  ;;  %v3419_v63 = vld [vmem:[#allocation9 + $0xb4] ss:$8 sps:$4 sm:$0xff]  }
 0x1c5   :  { %688 = vmatpush1.bf16.msra.mxu1 %v3280_v62 }
 0x1c6   :  { %689 = vmatprep.subr.bf16.mxu1 %v3283_v61  ;;  %v3331_v61 = vld [vmem:[#allocation8 + $0xe0] ss:$8 sps:$4 sm:$0xff]  }
 0x1c7   :  { %4108 = vst [vmem:[#allocation65_spill] sm:$0xff] %v3331_v61 }
 0x1c9   :  { %690 = vmatpush1.bf16.msra.mxu1 %v3286_v59  ;;  %v3307_v59 = vld [vmem:[#allocation6 + $0x1d4] ss:$8 sps:$4 sm:$0xff]  }
 0x1ca   :  { %691 = vmatprep.subr.bf16.mxu1 %v3289_v57  ;;  %4101 = vst [vmem:[#allocation58_spill] sm:$0xff] %v3307_v59  ;;  %v3310_v57 = vld [vmem:[#allocation6 + $0x1d0] ss:$8 sps:$4 sm:$0xff]  }
 0x1cb   :  { %4102 = vst [vmem:[#allocation59_spill] sm:$0xff] %v3310_v57 }
 0x1cd   :  { %692 = vmatpush1.bf16.msra.mxu1 %v3292_v54  ;;  %v3313_v54 = vld [vmem:[#allocation6 + $0x1e4] ss:$8 sps:$4 sm:$0xff]  }
 0x1ce   :  { %693 = vmatprep.subr.bf16.mxu1 %v3295_v53  ;;  %4103 = vst [vmem:[#allocation60_spill] sm:$0xff] %v3313_v54  ;;  %v3316_v53 = vld [vmem:[#allocation6 + $0x1e0] ss:$8 sps:$4 sm:$0xff]  }
 0x1cf   :  { %4104 = vst [vmem:[#allocation61_spill] sm:$0xff] %v3316_v53 }
 0x1d1   :  { %694 = vmatpush1.bf16.msra.mxu1 %v3298_v52  ;;  %v3319_v52 = vld [vmem:[#allocation6 + $0x1f4] ss:$8 sps:$4 sm:$0xff]  }
 0x1d2   :  { %695 = vmatprep.subr.bf16.mxu1 %v3301_v51  ;;  %4105 = vst [vmem:[#allocation62_spill] sm:$0xff] %v3319_v52  ;;  %v3322_v51 = vld [vmem:[#allocation6 + $0x1f0] ss:$8 sps:$4 sm:$0xff]  }
 0x1d3   :  { %4106 = vst [vmem:[#allocation63_spill] sm:$0xff] %v3322_v51 }
 0x1d5   :  { %696 = vmatpush1.bf16.msra.mxu1 %v3304_v50  ;;  %v224_v50 = vrot.slane %v3222_v58, 7  ;;  %v3346_v58 = vld [vmem:[#allocation9 + $0x4] ss:$8 sps:$4 sm:$0xff]  }
 0x1d6   :  { %697 = vmatprep.subr.bf16.mxu1 %v3307_v59  ;;  %4113 = vst [vmem:[#allocation70_spill] sm:$0xff] %v3346_v58 }
 0x1d7   :  { %v2199_v59 = vpack.c.bf16 %v224_v50, %v224_v50  ;;  %v3341_v50 = vld [vmem:[#allocation8 + $0x104] ss:$8 sps:$4 sm:$0xff]  }
 0x1d8   :  { %4111 = vst [vmem:[#allocation68_spill] sm:$0xff] %v3341_v50 }
 0x1d9   :  { %698 = vmatpush1.bf16.msra.mxu1 %v3310_v57  ;;  %v3329_v57 = vld [vmem:[#allocation8 + $0xe4] ss:$8 sps:$4 sm:$0xff]  }
 0x1da   :  { %699 = vmatprep.subr.bf16.mxu1 %v3313_v54  ;;  %4107 = vst [vmem:[#allocation64_spill] sm:$0xff] %v3329_v57  ;;  %1150 = vmatprep.subr.bf16.mxu0 %v3329_v57  ;;  %v3337_v54 = vld [vmem:[#allocation8 + $0xf0] ss:$8 sps:$4 sm:$0xff]  }
 0x1db   :  { %1151 = vmatpush1.bf16.msra.mxu0 %v3331_v61  ;;  %4110 = vst [vmem:[#allocation67_spill] sm:$0xff] %v3337_v54  ;;  %v3352_v61 = vld [vmem:[#allocation9 + $0x10] ss:$8 sps:$4 sm:$0xff]  }
 0x1dc   :  { %4115 = vst [vmem:[#allocation72_spill] sm:$0xff] %v3352_v61  ;;  %v3364_v57 = vld [vmem:[#allocation9 + $0x30] ss:$8 sps:$4 sm:$0xff]  }
 0x1dd   :  { %700 = vmatpush1.bf16.msra.mxu1 %v3316_v53  ;;  %v3335_v53 = vld [vmem:[#allocation8 + $0xf4] ss:$8 sps:$4 sm:$0xff]   ;;  %4119 = vst [vmem:[#allocation76_spill] sm:$0xff] %v3364_v57 }
 0x1de   :  { %701 = vmatprep.subr.bf16.mxu1 %v3319_v52  ;;  %4109 = vst [vmem:[#allocation66_spill] sm:$0xff] %v3335_v53  ;;  %1152 = vmatprep.subr.bf16.mxu0 %v3335_v53  ;;  %v3355_v53 = vld [vmem:[#allocation9 + $0x24] ss:$8 sps:$4 sm:$0xff]   ;;  %v3415_v52 = vld [vmem:[#allocation9 + $0xa0] ss:$8 sps:$4 sm:$0xff]  }
 0x1df   :  { %1153 = vmatpush1.bf16.msra.mxu0 %v3337_v54  ;;  %4116 = vst [vmem:[#allocation73_spill] sm:$0xff] %v3355_v53  ;;  %v3358_v54 = vld [vmem:[#allocation9 + $0x20] ss:$8 sps:$4 sm:$0xff]  }
 0x1e0   :  { %1163 = vmatprep.subr.bf16.mxu0 %v3341_v50  ;;  %4117 = vst [vmem:[#allocation74_spill] sm:$0xff] %v3358_v54  ;;  %v3361_v50 = vld [vmem:[#allocation9 + $0x34] ss:$8 sps:$4 sm:$0xff]  }
 0x1e1   :  { %702 = vmatpush1.bf16.msra.mxu1 %v3322_v51  ;;  %v3348_v51 = vld [vmem:[#allocation9 + $0x14] ss:$8 sps:$4 sm:$0xff]   ;;  %4118 = vst [vmem:[#allocation75_spill] sm:$0xff] %v3361_v50 }
 0x1e2   :  { %4114 = vst [vmem:[#allocation71_spill] sm:$0xff] %v3348_v51  ;;  %1614 = vmatprep.subr.bf16.mxu1 %v3346_v58 }
 0x1e4   :  { %2200 = vmatmul.mubr.msk.bf16.vlgmr.msra.gmra.mrb[4].mxu1 %vm3227_vm4, %v2199_v59  ;;  %v3344_v59 = vld [vmem:[#allocation9] ss:$8 sps:$4 sm:$0xff]  }
 0x1e5   :  { %4112 = vst [vmem:[#allocation69_spill] sm:$0xff] %v3344_v59  ;;  %1615 = vmatpush1.bf16.msra.mxu1 %v3344_v59  ;;  %v3367_v59 = vld [vmem:[#allocation9 + $0x44] ss:$8 sps:$4 sm:$0xff]  }
 0x1e6   :  { %1616 = vmatprep.subr.bf16.mxu1 %v3348_v51  ;;  %4120 = vst [vmem:[#allocation77_spill] sm:$0xff] %v3367_v59  ;;  %v3370_v51 = vld [vmem:[#allocation9 + $0x40] ss:$8 sps:$4 sm:$0xff]  }
 0x1e7   :  { %4121 = vst [vmem:[#allocation78_spill] sm:$0xff] %v3370_v51 }
 0x1e9   :  { %1617 = vmatpush1.bf16.msra.mxu1 %v3352_v61  ;;  %v3373_v61 = vld [vmem:[#allocation9 + $0x54] ss:$8 sps:$4 sm:$0xff]  }
 0x1ea   :  { %1618 = vmatprep.subr.bf16.mxu1 %v3355_v53  ;;  %4122 = vst [vmem:[#allocation79_spill] sm:$0xff] %v3373_v61  ;;  %v3376_v53 = vld [vmem:[#allocation9 + $0x50] ss:$8 sps:$4 sm:$0xff]  }
 0x1eb   :  { %4123 = vst [vmem:[#allocation80_spill] sm:$0xff] %v3376_v53 }
 0x1ed   :  { %1619 = vmatpush1.bf16.msra.mxu1 %v3358_v54  ;;  %v3379_v54 = vld [vmem:[#allocation9 + $0x64] ss:$8 sps:$4 sm:$0xff]  }
 0x1ee   :  { %1620 = vmatprep.subr.bf16.mxu1 %v3361_v50  ;;  %4124 = vst [vmem:[#allocation81_spill] sm:$0xff] %v3379_v54  ;;  %v3382_v50 = vld [vmem:[#allocation9 + $0x60] ss:$8 sps:$4 sm:$0xff]  }
 0x1ef   :  { %4125 = vst [vmem:[#allocation82_spill] sm:$0xff] %v3382_v50 }
 0x1f1   :  { %1621 = vmatpush1.bf16.msra.mxu1 %v3364_v57  ;;  %v3385_v57 = vld [vmem:[#allocation9 + $0x74] ss:$8 sps:$4 sm:$0xff]  }
 0x1f2   :  { %1622 = vmatprep.subr.bf16.mxu1 %v3367_v59  ;;  %4126 = vst [vmem:[#allocation83_spill] sm:$0xff] %v3385_v57  ;;  %v3388_v59 = vld [vmem:[#allocation9 + $0x70] ss:$8 sps:$4 sm:$0xff]  }
 0x1f3   :  { %4127 = vst [vmem:[#allocation84_spill] sm:$0xff] %v3388_v59 }
 0x1f5   :  { %1623 = vmatpush1.bf16.msra.mxu1 %v3370_v51  ;;  %v3391_v51 = vld [vmem:[#allocation9 + $0x84] ss:$8 sps:$4 sm:$0xff]  }
 0x1f6   :  { %1624 = vmatprep.subr.bf16.mxu1 %v3373_v61  ;;  %4128 = vst [vmem:[#allocation85_spill] sm:$0xff] %v3391_v51  ;;  %v3394_v61 = vld [vmem:[#allocation9 + $0x80] ss:$8 sps:$4 sm:$0xff]  }
 0x1f7   :  { %4129 = vst [vmem:[#allocation86_spill] sm:$0xff] %v3394_v61 }
 0x1f9   :  { %1625 = vmatpush1.bf16.msra.mxu1 %v3376_v53  ;;  %v3397_v53 = vld [vmem:[#allocation9 + $0x94] ss:$8 sps:$4 sm:$0xff]  }
 0x1fa   :  { %1626 = vmatprep.subr.bf16.mxu1 %v3379_v54  ;;  %4130 = vst [vmem:[#allocation87_spill] sm:$0xff] %v3397_v53  ;;  %v298_v54 = vld [vmem:[%s3936_s4] sm:$0x3] }
 0x1fb   :  { %v3412_v58 = vrot.slane %v298_v54, %v3207_v12 }
 0x1fd   :  { %1627 = vmatpush1.bf16.msra.mxu1 %v3382_v50  ;;  %v3403_v50 = vld [vmem:[#allocation9 + $0x90] ss:$8 sps:$4 sm:$0xff]   ;;  %4134 = vst [vmem:[#allocation91_spill] sm:$0xff] %v3412_v58 }
 0x1fe   :  { %1628 = vmatprep.subr.bf16.mxu1 %v3385_v57  ;;  %4131 = vst [vmem:[#allocation88_spill] sm:$0xff] %v3403_v50  ;;  %v3406_v57 = vrot.slane %v298_v54, %v3199_v60 }
 0x200   :  { %4132 = vst [vmem:[#allocation89_spill] sm:$0xff] %v3406_v57 }
 0x201   :  { %1629 = vmatpush1.bf16.msra.mxu1 %v3388_v59  ;;  %v3409_v59 = vld [vmem:[#allocation9 + $0xa4] ss:$8 sps:$4 sm:$0xff]  }
 0x202   :  { %1630 = vmatprep.subr.bf16.mxu1 %v3391_v51  ;;  %4133 = vst [vmem:[#allocation90_spill] sm:$0xff] %v3409_v59 }
 0x205   :  { %1631 = vmatpush1.bf16.msra.mxu1 %v3394_v61 }
 0x206   :  { %1632 = vmatprep.subr.bf16.mxu1 %v3397_v53 }
 0x209   :  { %1633 = vmatpush1.bf16.msra.mxu1 %v3403_v50  ;;  %v3428_v50 = vld [vmem:[#allocation9 + $0xc4] ss:$8 sps:$4 sm:$0xff]  }
 0x20a   :  { %1634 = vmatprep.subr.bf16.mxu1 %v3409_v59  ;;  %4135 = vst [vmem:[#allocation92_spill] sm:$0xff] %v3428_v50  ;;  %v3430_v59 = vld [vmem:[#allocation8 + $0x100] ss:$8 sps:$4 sm:$0xff]  }
 0x20b   :  { %4136 = vst [vmem:[#allocation93_spill] sm:$0xff] %v3430_v59 }
 0x20d   :  { %1635 = vmatpush1.bf16.msra.mxu1 %v3415_v52 }
 0x20e   :  { %1636 = vmatprep.subr.bf16.mxu1 %v3419_v63 }
 0x211   :  { %1637 = vmatpush1.bf16.msra.mxu1 %v3425_v4 }
 0x212   :  { %1638 = vmatprep.subr.bf16.mxu1 %v3428_v50  ;;  %v2742_v50 = vld [vmem:[#allocation3 + $0x30] ss:$8 sps:$4 sm:$0xff]  }
 0x2b7   :  { %v705_v51 = vpop.f32.mrb[4].mxu1 }
 0x2b8   :  { %v2381_v62 = vadd.f32 %v705_v51, %v3406_v57  ;;  %v707_v61 = vpop.f32.mrb[5].mxu1 }
 0x2b9   :  { %v2382_v0 = vadd.f32 %v707_v61, %v3412_v58  ;;  %v709_v53 = vpop.f32.mrb[6].mxu1  ;;  %v3468_v58 = vld [vmem:[#allocation8 + $0x140] ss:$8 sps:$4 sm:$0xff]  }
 0x2ba   :  { %v3422_v2 = vmax.f32 %v2381_v62, 0.0  ;;  %v710_v3 = vpop.f32.mrb[7].mxu1  ;;  %v3434_v53 = vld [vmem:[#allocation8 + $0x114] ss:$8 sps:$4 sm:$0xff]   ;;  %4147 = vst [vmem:[#allocation104_spill] sm:$0xff] %v3468_v58 }
 0x2bb   :  { %v713_v54 = vmax.f32 %v2382_v0, 0.0  ;;  %4137 = vst [vmem:[#allocation94_spill] sm:$0xff] %v3434_v53  ;;  %v3437_v0 = vld [vmem:[#allocation9 + $0xc0] ss:$8 sps:$4 sm:$0xff]   ;;  %v3440_v3 = vld [vmem:[#allocation9 + $0xd4] ss:$8 sps:$4 sm:$0xff]  }
 0x2bc   :  { %v722_v61 = vpack.c.bf16 %v3422_v2, %v3422_v2  ;;  %4138 = vst [vmem:[#allocation95_spill] sm:$0xff] %v3437_v0  ;;  %4139 = vst [vmem:[#allocation96_spill] sm:$0xff] %v3440_v3  ;;  %1639 = vmatpush1.bf16.msra.mxu1 %v3437_v0  ;;  %v2739_v0 = vld [vmem:[#allocation3 + $0x24] ss:$8 sps:$4 sm:$0xff]  }
 0x2bd   :  { %v717_v51 = vrot.slane %v713_v54, 7  ;;  %v723_v57 = vpack.c.bf16 %v713_v54, %v713_v54  ;;  %v3445_v54 = vld [vmem:[#allocation8 + $0x110] ss:$8 sps:$4 sm:$0xff]   ;;  %1640 = vmatprep.subr.bf16.mxu1 %v3440_v3  ;;  %v2737_v3 = vld [vmem:[#allocation3 + $0x14] ss:$8 sps:$4 sm:$0xff]  }
 0x2be   :  { %4140 = vst [vmem:[#allocation97_spill] sm:$0xff] %v3445_v54 }
 0x2bf   :  { %v2268_v62 = vpack.c.bf16 %v717_v51, %v717_v51  ;;  %1154 = vmatprep.mubr.bf16.mxu0 %v723_v57  ;;  %v3448_v51 = vld [vmem:[#allocation8 + $0x124] ss:$8 sps:$4 sm:$0xff]   ;;  %v3451_v57 = vld [vmem:[#allocation9 + $0xd0] ss:$8 sps:$4 sm:$0xff]  }
 0x2c0   :  { %1155 = vmatmul.mubr.bf16.vlgmr.msra.gmra.mrb[0].mxu0 %v722_v61  ;;  %4141 = vst [vmem:[#allocation98_spill] sm:$0xff] %v3448_v51  ;;  %4142 = vst [vmem:[#allocation99_spill] sm:$0xff] %v3451_v57  ;;  %v3455_v61 = vld [vmem:[#allocation8 + $0x120] ss:$8 sps:$4 sm:$0xff]   ;;  %1641 = vmatpush1.bf16.msra.mxu1 %v3451_v57  ;;  %v2735_v57 = vld [vmem:[#allocation3 + $0x4] ss:$8 sps:$4 sm:$0xff]  }
 0x2c1   :  { %1164 = vmatpush1.bf16.msra.mxu0 %v3430_v59  ;;  %2269 = vmatprep.mubr.msk.bf16.mxu0 %vm3227_vm4, %v2268_v62  ;;  %4143 = vst [vmem:[#allocation100_spill] sm:$0xff] %v3455_v61  ;;  %v3458_v59 = vld [vmem:[#allocation8 + $0x134] ss:$8 sps:$4 sm:$0xff]   ;;  %v3462_v62 = vld [vmem:[#allocation8 + $0x130] ss:$8 sps:$4 sm:$0xff]  }
 0x2c2   :  { %1165 = vmatprep.subr.bf16.mxu0 %v3434_v53  ;;  %4144 = vst [vmem:[#allocation101_spill] sm:$0xff] %v3458_v59  ;;  %4145 = vst [vmem:[#allocation102_spill] sm:$0xff] %v3462_v62  ;;  %v3465_v53 = vld [vmem:[#allocation8 + $0x144] ss:$8 sps:$4 sm:$0xff]  }
 0x2c3   :  { %4146 = vst [vmem:[#allocation103_spill] sm:$0xff] %v3465_v53 }
 0x2c5   :  { %1166 = vmatpush1.bf16.msra.mxu0 %v3445_v54  ;;  %v3471_v54 = vld [vmem:[#allocation8 + $0x154] ss:$8 sps:$4 sm:$0xff]  }
 0x2c6   :  { %1167 = vmatprep.subr.bf16.mxu0 %v3448_v51  ;;  %4148 = vst [vmem:[#allocation105_spill] sm:$0xff] %v3471_v54  ;;  %v3474_v51 = vld [vmem:[#allocation8 + $0x150] ss:$8 sps:$4 sm:$0xff]  }
 0x2c7   :  { %4149 = vst [vmem:[#allocation106_spill] sm:$0xff] %v3474_v51 }
 0x2c9   :  { %1168 = vmatpush1.bf16.msra.mxu0 %v3455_v61  ;;  %v3477_v61 = vld [vmem:[#allocation8 + $0x164] ss:$8 sps:$4 sm:$0xff]  }
 0x2ca   :  { %1169 = vmatprep.subr.bf16.mxu0 %v3458_v59  ;;  %4150 = vst [vmem:[#allocation107_spill] sm:$0xff] %v3477_v61  ;;  %v3480_v59 = vld [vmem:[#allocation8 + $0x160] ss:$8 sps:$4 sm:$0xff]  }
 0x2cb   :  { %4151 = vst [vmem:[#allocation108_spill] sm:$0xff] %v3480_v59 }
 0x2cd   :  { %1170 = vmatpush1.bf16.msra.mxu0 %v3462_v62  ;;  %v3483_v62 = vld [vmem:[#allocation8 + $0x174] ss:$8 sps:$4 sm:$0xff]  }
 0x2ce   :  { %1171 = vmatprep.subr.bf16.mxu0 %v3465_v53  ;;  %4152 = vst [vmem:[#allocation109_spill] sm:$0xff] %v3483_v62  ;;  %v3486_v53 = vld [vmem:[#allocation8 + $0x170] ss:$8 sps:$4 sm:$0xff]  }
 0x2cf   :  { %4153 = vst [vmem:[#allocation110_spill] sm:$0xff] %v3486_v53 }
 0x2d1   :  { %1172 = vmatpush1.bf16.msra.mxu0 %v3468_v58  ;;  %v3489_v58 = vld [vmem:[#allocation8 + $0x184] ss:$8 sps:$4 sm:$0xff]  }
 0x2d2   :  { %1173 = vmatprep.subr.bf16.mxu0 %v3471_v54  ;;  %4154 = vst [vmem:[#allocation111_spill] sm:$0xff] %v3489_v58  ;;  %v3492_v54 = vld [vmem:[#allocation8 + $0x180] ss:$8 sps:$4 sm:$0xff]  }
 0x2d3   :  { %4155 = vst [vmem:[#allocation112_spill] sm:$0xff] %v3492_v54 }
 0x2d5   :  { %1174 = vmatpush1.bf16.msra.mxu0 %v3474_v51  ;;  %v3495_v51 = vld [vmem:[#allocation8 + $0x194] ss:$8 sps:$4 sm:$0xff]  }
 0x2d6   :  { %1175 = vmatprep.subr.bf16.mxu0 %v3477_v61  ;;  %4156 = vst [vmem:[#allocation113_spill] sm:$0xff] %v3495_v51  ;;  %v3498_v61 = vld [vmem:[#allocation8 + $0x190] ss:$8 sps:$4 sm:$0xff]  }
 0x2d7   :  { %4157 = vst [vmem:[#allocation114_spill] sm:$0xff] %v3498_v61 }
 0x2d9   :  { %1176 = vmatpush1.bf16.msra.mxu0 %v3480_v59  ;;  %v3501_v59 = vld [vmem:[#allocation8 + $0x1a4] ss:$8 sps:$4 sm:$0xff]  }
 0x2da   :  { %1177 = vmatprep.subr.bf16.mxu0 %v3483_v62  ;;  %4158 = vst [vmem:[#allocation115_spill] sm:$0xff] %v3501_v59  ;;  %v3504_v62 = vld [vmem:[#allocation8 + $0x1a0] ss:$8 sps:$4 sm:$0xff]  }
 0x2db   :  { %4159 = vst [vmem:[#allocation116_spill] sm:$0xff] %v3504_v62 }
 0x2dd   :  { %1178 = vmatpush1.bf16.msra.mxu0 %v3486_v53  ;;  %v3507_v53 = vld [vmem:[#allocation8 + $0x1b4] ss:$8 sps:$4 sm:$0xff]  }
 0x2de   :  { %1179 = vmatprep.subr.bf16.mxu0 %v3489_v58  ;;  %4160 = vst [vmem:[#allocation117_spill] sm:$0xff] %v3507_v53  ;;  %v3510_v58 = vld [vmem:[#allocation8 + $0x1b0] ss:$8 sps:$4 sm:$0xff]  }
 0x2df   :  { %4161 = vst [vmem:[#allocation118_spill] sm:$0xff] %v3510_v58 }
 0x2e1   :  { %1180 = vmatpush1.bf16.msra.mxu0 %v3492_v54  ;;  %v3513_v54 = vld [vmem:[#allocation8 + $0x1c4] ss:$8 sps:$4 sm:$0xff]  }
 0x2e2   :  { %1181 = vmatprep.subr.bf16.mxu0 %v3495_v51  ;;  %4162 = vst [vmem:[#allocation119_spill] sm:$0xff] %v3513_v54  ;;  %v3516_v51 = vld [vmem:[#allocation8 + $0x1c0] ss:$8 sps:$4 sm:$0xff]  }
 0x2e3   :  { %4163 = vst [vmem:[#allocation120_spill] sm:$0xff] %v3516_v51 }
 0x2e5   :  { %1182 = vmatpush1.bf16.msra.mxu0 %v3498_v61  ;;  %v3519_v61 = vld [vmem:[#allocation8 + $0x1d4] ss:$8 sps:$4 sm:$0xff]  }
 0x2e6   :  { %1183 = vmatprep.subr.bf16.mxu0 %v3501_v59  ;;  %4164 = vst [vmem:[#allocation121_spill] sm:$0xff] %v3519_v61  ;;  %v3522_v59 = vld [vmem:[#allocation8 + $0x1d0] ss:$8 sps:$4 sm:$0xff]  }
 0x2e7   :  { %4165 = vst [vmem:[#allocation122_spill] sm:$0xff] %v3522_v59 }
 0x2e9   :  { %1184 = vmatpush1.bf16.msra.mxu0 %v3504_v62  ;;  %v3525_v62 = vld [vmem:[#allocation8 + $0x1e4] ss:$8 sps:$4 sm:$0xff]  }
 0x2ea   :  { %1185 = vmatprep.subr.bf16.mxu0 %v3507_v53  ;;  %4166 = vst [vmem:[#allocation123_spill] sm:$0xff] %v3525_v62  ;;  %v3528_v53 = vld [vmem:[#allocation8 + $0x1e0] ss:$8 sps:$4 sm:$0xff]  }
 0x2eb   :  { %4167 = vst [vmem:[#allocation124_spill] sm:$0xff] %v3528_v53 }
 0x2ed   :  { %1186 = vmatpush1.bf16.msra.mxu0 %v3510_v58  ;;  %v3531_v58 = vld [vmem:[#allocation8 + $0x1f4] ss:$8 sps:$4 sm:$0xff]  }
 0x2ee   :  { %1187 = vmatprep.subr.bf16.mxu0 %v3513_v54  ;;  %4168 = vst [vmem:[#allocation125_spill] sm:$0xff] %v3531_v58  ;;  %v3534_v54 = vld [vmem:[#allocation8 + $0x1f0] ss:$8 sps:$4 sm:$0xff]  }
 0x2ef   :  { %4169 = vst [vmem:[#allocation126_spill] sm:$0xff] %v3534_v54 }
 0x2f1   :  { %1188 = vmatpush1.bf16.msra.mxu0 %v3516_v51  ;;  %v716_v51 = vrot.slane %v3422_v2, 7  ;;  %v1729_v2 = vpop.permute.xlu0 %1728 }
 0x2f2   :  { %1189 = vmatprep.subr.bf16.mxu0 %v3519_v61 }
 0x2f3   :  { %v2273_v61 = vpack.c.bf16 %v716_v51, %v716_v51  ;;  %v4171_v51 = vunpack.c.l.bf16 %v3129_v55 }
 0x2f5   :  { %1190 = vmatpush1.bf16.msra.mxu0 %v3522_v59  ;;  %v2736_v59 = vld [vmem:[#allocation3] ss:$8 sps:$4 sm:$0xff]  }
 0x2f6   :  { %1191 = vmatprep.subr.bf16.mxu0 %v3525_v62  ;;  %v4170_v62 = vmov 0  }
 0x2f9   :  { %1192 = vmatpush1.bf16.msra.mxu0 %v3528_v53  ;;  %v2738_v53 = vld [vmem:[#allocation3 + $0x10] ss:$8 sps:$4 sm:$0xff]  }
 0x2fa   :  { %1193 = vmatprep.subr.bf16.mxu0 %v3531_v58  ;;  %v2740_v58 = vld [vmem:[#allocation3 + $0x20] ss:$8 sps:$4 sm:$0xff]  }
 0x2fd   :  { %1194 = vmatpush1.bf16.msra.mxu0 %v3534_v54  ;;  %v2741_v54 = vld [vmem:[#allocation3 + $0x34] ss:$8 sps:$4 sm:$0xff]  }
 0x2fe   :  { %1736 = vmatprep.subr.bf16.mxu0 %v2735_v57  ;;  %v1731_v57 = vsel %vm112_vm1, %v4171_v51, %v1729_v2  ;;  %v3646_v2 = vld [vmem:[#allocation9 + $0x150] ss:$8 sps:$4 sm:$0xff]   ;;  %v3651_v51 = vld [vmem:[#allocation9 + $0x164] ss:$8 sps:$4 sm:$0xff]  }
 0x300   :  { %2274 = vmatmul.mubr.msk.bf16.vlgmr.msra.gmra.mrb[0].mxu0 %vm3227_vm4, %v2273_v61  ;;  %v1732_v61 = vpack.c.bf16 %v1731_v57, %v1731_v57  ;;  %v3656_v57 = vld [vmem:[#allocation9 + $0x160] ss:$8 sps:$4 sm:$0xff]  }
 0x301   :  { %1737 = vmatpush1.bf16.msra.mxu0 %v2736_v59  ;;  %1768 = vmatprep.mubr.bf16.mxu0 %v4170_v62  ;;  %v2743_v59 = vld [vmem:[#allocation6 + $0x4] ss:$8 sps:$4 sm:$0xff]  }
 0x302   :  { %1738 = vmatprep.subr.bf16.mxu0 %v2737_v3 }
 0x305   :  { %1739 = vmatpush1.bf16.msra.mxu0 %v2738_v53 }
 0x306   :  { %1740 = vmatprep.subr.bf16.mxu0 %v2739_v0 }
 0x309   :  { %1741 = vmatpush1.bf16.msra.mxu0 %v2740_v58  ;;  %v3634_v58 = vld [vmem:[#allocation9 + $0x144] ss:$8 sps:$4 sm:$0xff]  }
 0x30a   :  { %1742 = vmatprep.subr.bf16.mxu0 %v2741_v54  ;;  %v3642_v54 = vld [vmem:[#allocation9 + $0x154] ss:$8 sps:$4 sm:$0xff]  }
 0x30d   :  { %1743 = vmatpush1.bf16.msra.mxu0 %v2742_v50 }
 0x30e   :  { %1791 = vmatprep.subr.bf16.mxu0 %v2743_v59  ;;  %v3692_v59 = vld [vmem:[#allocation9 + $0x1b4] ss:$8 sps:$4 sm:$0xff]  }
 0x310   :  { %2350 = vmatmul.mubr.msk.bf16.vlgmr.msra.gmra.mrb[4].mxu0 %vm175_vm2, %v1732_v61  ;;  %v3664_v61 = vld [vmem:[#allocation9 + $0x170] ss:$8 sps:$4 sm:$0xff]  }
 0x311   :  { %1792 = vmatpush1.bf16.msra.mxu0 %v3016_v17  ;;  %v3578_v17 = vld [vmem:[#allocation9 + $0xe4] ss:$8 sps:$4 sm:$0xff]  }
 0x312   :  { %1793 = vmatprep.subr.bf16.mxu0 %v3018_v19  ;;  %v3580_v19 = vld [vmem:[#allocation9 + $0xe0] ss:$8 sps:$4 sm:$0xff]   ;;  %1642 = vmatprep.subr.bf16.mxu1 %v3578_v17 }
 0x313   :  { %1643 = vmatpush1.bf16.msra.mxu1 %v3580_v19 }
 0x315   :  { %1794 = vmatpush1.bf16.msra.mxu0 %v3022_v20  ;;  %v3584_v20 = vld [vmem:[#allocation9 + $0xf4] ss:$8 sps:$4 sm:$0xff]  }
 0x316   :  { %1795 = vmatprep.subr.bf16.mxu0 %v3025_v21  ;;  %v3586_v21 = vld [vmem:[#allocation9 + $0xf0] ss:$8 sps:$4 sm:$0xff]   ;;  %1644 = vmatprep.subr.bf16.mxu1 %v3584_v20 }
 0x317   :  { %1645 = vmatpush1.bf16.msra.mxu1 %v3586_v21 }
 0x319   :  { %1796 = vmatpush1.bf16.msra.mxu0 %v3028_v22  ;;  %v3590_v22 = vld [vmem:[#allocation9 + $0x104] ss:$8 sps:$4 sm:$0xff]  }
 0x31a   :  { %1797 = vmatprep.subr.bf16.mxu0 %v3031_v23  ;;  %1655 = vmatprep.subr.bf16.mxu1 %v3590_v22  ;;  %v790_v23 = vld [vmem:[%s3938_s6] sm:$0x3] }
 0x31d   :  { %1798 = vmatpush1.bf16.msra.mxu0 %v3034_v24  ;;  %v3597_v24 = vrot.slane %v790_v23, %v3199_v60 }
 0x31e   :  { %1799 = vmatprep.subr.bf16.mxu0 %v3037_v25  ;;  %v3600_v25 = vrot.slane %v790_v23, %v3207_v12  ;;  %v3696_v23 = vld [vmem:[#allocation9 + $0x1b0] ss:$8 sps:$4 sm:$0xff]  }
 0x321   :  { %1800 = vmatpush1.bf16.msra.mxu0 %v3040_v26 }
 0x322   :  { %1801 = vmatprep.subr.bf16.mxu0 %v3043_v27 }
 0x325   :  { %1802 = vmatpush1.bf16.msra.mxu0 %v3046_v28 }
 0x326   :  { %1803 = vmatprep.subr.bf16.mxu0 %v3049_v29 }
 0x329   :  { %1804 = vmatpush1.bf16.msra.mxu0 %v3052_v30 }
 0x32a   :  { %1805 = vmatprep.subr.bf16.mxu0 %v3055_v31 }
 0x32d   :  { %1806 = vmatpush1.bf16.msra.mxu0 %v3058_v32 }
 0x32e   :  { %1807 = vmatprep.subr.bf16.mxu0 %v3061_v33 }
 0x331   :  { %1808 = vmatpush1.bf16.msra.mxu0 %v3064_v34 }
 0x332   :  { %1809 = vmatprep.subr.bf16.mxu0 %v3067_v35 }
 0x335   :  { %1810 = vmatpush1.bf16.msra.mxu0 %v3070_v36  ;;  %v3606_v36 = vld [vmem:[#allocation9 + $0x100] ss:$8 sps:$4 sm:$0xff]  }
 0x336   :  { %1811 = vmatprep.subr.bf16.mxu0 %v3073_v37 }
 0x339   :  { %1812 = vmatpush1.bf16.msra.mxu0 %v3076_v38  ;;  %v3610_v38 = vld [vmem:[#allocation9 + $0x114] ss:$8 sps:$4 sm:$0xff]  }
 0x33a   :  { %1813 = vmatprep.subr.bf16.mxu0 %v3079_v39 }
 0x33d   :  { %1814 = vmatpush1.bf16.msra.mxu0 %v3082_v40  ;;  %v3615_v40 = vld [vmem:[#allocation9 + $0x110] ss:$8 sps:$4 sm:$0xff]  }
 0x33e   :  { %1815 = vmatprep.subr.bf16.mxu0 %v3085_v41  ;;  %v3618_v41 = vld [vmem:[#allocation9 + $0x124] ss:$8 sps:$4 sm:$0xff]  }
 0x341   :  { %1816 = vmatpush1.bf16.msra.mxu0 %v3088_v42  ;;  %v3621_v42 = vld [vmem:[#allocation9 + $0x120] ss:$8 sps:$4 sm:$0xff]  }
 0x342   :  { %1817 = vmatprep.subr.bf16.mxu0 %v3091_v43  ;;  %v3624_v43 = vld [vmem:[#allocation9 + $0x134] ss:$8 sps:$4 sm:$0xff]  }
 0x345   :  { %1818 = vmatpush1.bf16.msra.mxu0 %v3094_v44 }
 0x346   :  { %1819 = vmatprep.subr.bf16.mxu0 %v3098_v45 }
 0x349   :  { %1820 = vmatpush1.bf16.msra.mxu0 %v3100_v46 }
 0x34a   :  { %1821 = vmatprep.subr.bf16.mxu0 %v3104_v47 }
 0x34d   :  { %1822 = vmatpush1.bf16.msra.mxu0 %v3106_v48 }
 0x34e   :  { %1832 = vmatprep.subr.bf16.mxu0 %v3110_v49  ;;  %v3629_v49 = vld [vmem:[#allocation9 + $0x130] ss:$8 sps:$4 sm:$0xff]  }
 0x3d3   :  { %v1197_v26 = vpop.f32.mrb[0].mxu0 }
 0x3d4   :  { %v2383_v27 = vadd.f32 %v1197_v26, %v3597_v24  ;;  %v1199_v28 = vpop.f32.mrb[1].mxu0  ;;  %v3700_v26 = vld [vmem:[#allocation9 + $0x1c4] ss:$8 sps:$4 sm:$0xff]  }
 0x3d5   :  { %v2384_v29 = vadd.f32 %v1199_v28, %v3600_v25  ;;  %v1201_v30 = vpop.f32.mrb[2].mxu0  ;;  %v4176_v28 = vld [vmem:[#allocation48_spill] sm:$0xff] }
 0x3d6   :  { %v3604_v31 = vmax.f32 %v2383_v27, 0.0  ;;  %v1202_v32 = vpop.f32.mrb[3].mxu0  ;;  %v3704_v27 = vld [vmem:[#allocation9 + $0x1c0] ss:$8 sps:$4 sm:$0xff]  }
 0x3d7   :  { %v1205_v33 = vmax.f32 %v2384_v29, 0.0  ;;  %v3708_v29 = vld [vmem:[#allocation9 + $0x1d4] ss:$8 sps:$4 sm:$0xff]   ;;  %v4177_v30 = vld [vmem:[#allocation49_spill] sm:$0xff] }
 0x3d8   :  { %v1214_v37 = vpack.c.bf16 %v3604_v31, %v3604_v31  ;;  %v3712_v32 = vld [vmem:[#allocation9 + $0x1d0] ss:$8 sps:$4 sm:$0xff]  }
 0x3d9   :  { %v1209_v34 = vrot.slane %v1205_v33, 7  ;;  %v1215_v35 = vpack.c.bf16 %v1205_v33, %v1205_v33  ;;  %v4178_v33 = vld [vmem:[#allocation50_spill] sm:$0xff] }
 0x3db   :  { %v2342_v39 = vpack.c.bf16 %v1209_v34, %v1209_v34  ;;  %1646 = vmatprep.mubr.bf16.mxu1 %v1215_v35  ;;  %v3716_v34 = vld [vmem:[#allocation9 + $0x1e4] ss:$8 sps:$4 sm:$0xff]   ;;  %v4179_v35 = vld [vmem:[#allocation51_spill] sm:$0xff] }
 0x3dc   :  { %1647 = vmatmul.mubr.bf16.vlgmr.msra.gmra.mrb[8].mxu1 %v1214_v37  ;;  %v3720_v37 = vld [vmem:[#allocation9 + $0x1e0] ss:$8 sps:$4 sm:$0xff]  }
 0x3dd   :  { %1656 = vmatpush1.bf16.msra.mxu1 %v3606_v36  ;;  %2343 = vmatprep.mubr.msk.bf16.mxu1 %vm3227_vm4, %v2342_v39  ;;  %v4180_v39 = vld [vmem:[#allocation52_spill] sm:$0xff] }
 0x3de   :  { %1657 = vmatprep.subr.bf16.mxu1 %v3610_v38 }
 0x3e1   :  { %1658 = vmatpush1.bf16.msra.mxu1 %v3615_v40 }
 0x3e2   :  { %1659 = vmatprep.subr.bf16.mxu1 %v3618_v41 }
 0x3e3   :  { %v1770_v44 = vpop.f32.mrb[4].mxu0 }
 0x3e4   :  { %v1771_v45 = vadd.f32 %v1770_v44, %v3213_v15  ;;  %v1772_v46 = vpop.f32.mrb[5].mxu0  ;;  %v3637_v15 = vld [vmem:[#allocation9 + $0x140] ss:$8 sps:$4 sm:$0xff]   ;;  %v3724_v44 = vld [vmem:[#allocation9 + $0x1f4] ss:$8 sps:$4 sm:$0xff]  }
 0x3e5   :  { %1660 = vmatpush1.bf16.msra.mxu1 %v3621_v42  ;;  %v1773_v47 = vadd.f32 %v1772_v46, %v3217_v14  ;;  %v1774_v48 = vpop.f32.mrb[6].mxu0  ;;  %v3728_v46 = vld [vmem:[#allocation9 + $0x1f0] ss:$8 sps:$4 sm:$0xff]  }
 0x3e6   :  { %v3631_v55 = vmax.f32 %v1771_v45, 0.0  ;;  %v1775_v50 = vpop.f32.mrb[7].mxu0  ;;  %1661 = vmatprep.subr.bf16.mxu1 %v3624_v43  ;;  %v4181_v45 = vld [vmem:[#allocation53_spill] sm:$0xff]  ;;  %v4182_v48 = vld [vmem:[#allocation54_spill] sm:$0xff] }
 0x3e7   :  { %v1778_v53 = vmax.f32 %v1773_v47, 0.0  ;;  %v1208_v47 = vrot.slane %v3604_v31, 7  ;;  %v4183_v50 = vld [vmem:[#allocation55_spill] sm:$0xff]  ;;  %v4188_v31 = vld [vmem:[#allocation58_spill] sm:$0xff] }
 0x3e8   :  { %v1787_v14 = vpack.c.bf16 %v3631_v55, %v3631_v55 }
 0x3e9   :  { %v1782_v0 = vrot.slane %v1778_v53, 7  ;;  %v1788_v3 = vpack.c.bf16 %v1778_v53, %v1778_v53  ;;  %1662 = vmatpush1.bf16.msra.mxu1 %v3629_v49  ;;  %v2347_v53 = vpack.c.bf16 %v1208_v47, %v1208_v47  ;;  %v4198_v47 = vld [vmem:[#allocation63_spill] sm:$0xff] }
 0x3ea   :  { %1663 = vmatprep.subr.bf16.mxu1 %v3634_v58 }
 0x3eb   :  { %v2354_v62 = vpack.c.bf16 %v1782_v0, %v1782_v0  ;;  %1823 = vmatprep.mubr.bf16.mxu0 %v1788_v3  ;;  %v4184_v0 = vld [vmem:[#allocation56_spill] sm:$0xff] }
 0x3ec   :  { %1824 = vmatmul.mubr.bf16.vlgmr.msra.gmra.mrb[8].mxu0 %v1787_v14  ;;  %v4185_v3 = vld [vmem:[#allocation16_spill] sm:$0xff]  ;;  %v4186_v14 = vld [vmem:[#allocation57_spill] sm:$0xff] }
 0x3ed   :  { %1664 = vmatpush1.bf16.msra.mxu1 %v3637_v15  ;;  %1833 = vmatpush1.bf16.msra.mxu0 %v3225_v5  ;;  %v3660_v5 = vld [vmem:[#allocation9 + $0x174] ss:$8 sps:$4 sm:$0xff]  }
 0x3ee   :  { %2355 = vmatprep.mubr.msk.bf16.mxu0 %vm3227_vm4, %v2354_v62  ;;  %1665 = vmatprep.subr.bf16.mxu1 %v3642_v54  ;;  %v4187_v62 = vld [vmem:[#allocation17_spill] sm:$0xff] }
 0x3ef   :  { %1834 = vmatprep.subr.bf16.mxu0 %v3233_v13  ;;  %v3668_v13 = vld [vmem:[#allocation9 + $0x184] ss:$8 sps:$4 sm:$0xff]  }
 0x3f1   :  { %1666 = vmatpush1.bf16.msra.mxu1 %v3646_v2  ;;  %1835 = vmatpush1.bf16.msra.mxu0 %v3238_v7  ;;  %v3672_v7 = vld [vmem:[#allocation9 + $0x180] ss:$8 sps:$4 sm:$0xff]  }
 0x3f2   :  { %1667 = vmatprep.subr.bf16.mxu1 %v3651_v51  ;;  %1836 = vmatprep.subr.bf16.mxu0 %v3241_v8  ;;  %v3676_v8 = vld [vmem:[#allocation9 + $0x194] ss:$8 sps:$4 sm:$0xff]  }
 0x3f5   :  { %1668 = vmatpush1.bf16.msra.mxu1 %v3656_v57  ;;  %1837 = vmatpush1.bf16.msra.mxu0 %v3244_v10  ;;  %v3680_v10 = vld [vmem:[#allocation9 + $0x190] ss:$8 sps:$4 sm:$0xff]  }
 0x3f6   :  { %1669 = vmatprep.subr.bf16.mxu1 %v3660_v5  ;;  %1838 = vmatprep.subr.bf16.mxu0 %v3247_v6  ;;  %v3684_v6 = vld [vmem:[#allocation9 + $0x1a4] ss:$8 sps:$4 sm:$0xff]  }
 0x3f9   :  { %1670 = vmatpush1.bf16.msra.mxu1 %v3664_v61  ;;  %1839 = vmatpush1.bf16.msra.mxu0 %v3250_v56  ;;  %v3688_v56 = vld [vmem:[#allocation9 + $0x1a0] ss:$8 sps:$4 sm:$0xff]  }
 0x3fa   :  { %1671 = vmatprep.subr.bf16.mxu1 %v3668_v13  ;;  %1840 = vmatprep.subr.bf16.mxu0 %v3253_v11  ;;  %v4172_v11 = vld [vmem:[#allocation44_spill] sm:$0xff] }
 0x3fd   :  { %1672 = vmatpush1.bf16.msra.mxu1 %v3672_v7  ;;  %1841 = vmatpush1.bf16.msra.mxu0 %v3256_v16  ;;  %v4173_v16 = vld [vmem:[#allocation45_spill] sm:$0xff] }
 0x3fe   :  { %1673 = vmatprep.subr.bf16.mxu1 %v3676_v8  ;;  %1842 = vmatprep.subr.bf16.mxu0 %v3259_v18  ;;  %v4174_v18 = vld [vmem:[#allocation46_spill] sm:$0xff] }
 0x401   :  { %1674 = vmatpush1.bf16.msra.mxu1 %v3680_v10  ;;  %1843 = vmatpush1.bf16.msra.mxu0 %v3262_v9  ;;  %v4175_v9 = vld [vmem:[#allocation47_spill] sm:$0xff] }
 0x402   :  { %1675 = vmatprep.subr.bf16.mxu1 %v3684_v6  ;;  %1844 = vmatprep.subr.bf16.mxu0 %v4172_v11  ;;  %v4189_v11 = vld [vmem:[#allocation18_spill] sm:$0xff] }
 0x405   :  { %1676 = vmatpush1.bf16.msra.mxu1 %v3688_v56  ;;  %1845 = vmatpush1.bf16.msra.mxu0 %v4173_v16  ;;  %v4190_v16 = vld [vmem:[#allocation59_spill] sm:$0xff] }
 0x406   :  { %1677 = vmatprep.subr.bf16.mxu1 %v3692_v59  ;;  %1846 = vmatprep.subr.bf16.mxu0 %v4174_v18  ;;  %v4191_v18 = vld [vmem:[#allocation19_spill] sm:$0xff] }
 0x409   :  { %1678 = vmatpush1.bf16.msra.mxu1 %v3696_v23  ;;  %1847 = vmatpush1.bf16.msra.mxu0 %v4175_v9  ;;  %v4192_v9 = vld [vmem:[#allocation60_spill] sm:$0xff] }
 0x40a   :  { %1679 = vmatprep.subr.bf16.mxu1 %v3700_v26  ;;  %1848 = vmatprep.subr.bf16.mxu0 %v4176_v28  ;;  %v4193_v28 = vld [vmem:[#allocation20_spill] sm:$0xff] }
 0x40d   :  { %1680 = vmatpush1.bf16.msra.mxu1 %v3704_v27  ;;  %1849 = vmatpush1.bf16.msra.mxu0 %v4177_v30  ;;  %v4194_v30 = vld [vmem:[#allocation61_spill] sm:$0xff] }
 0x40e   :  { %1681 = vmatprep.subr.bf16.mxu1 %v3708_v29  ;;  %1850 = vmatprep.subr.bf16.mxu0 %v4178_v33  ;;  %v4195_v33 = vld [vmem:[#allocation21_spill] sm:$0xff] }
 0x411   :  { %1682 = vmatpush1.bf16.msra.mxu1 %v3712_v32  ;;  %1851 = vmatpush1.bf16.msra.mxu0 %v4179_v35  ;;  %v1781_v35 = vrot.slane %v3631_v55, 7  ;;  %v4204_v55 = vld [vmem:[#allocation26_spill] sm:$0xff] }
 0x412   :  { %1683 = vmatprep.subr.bf16.mxu1 %v3716_v34  ;;  %1852 = vmatprep.subr.bf16.mxu0 %v4180_v39  ;;  %v4196_v39 = vld [vmem:[#allocation62_spill] sm:$0xff] }
 0x415   :  { %1684 = vmatpush1.bf16.msra.mxu1 %v3720_v37  ;;  %1853 = vmatpush1.bf16.msra.mxu0 %v4181_v45  ;;  %v4197_v45 = vld [vmem:[#allocation22_spill] sm:$0xff] }
 0x416   :  { %1685 = vmatprep.subr.bf16.mxu1 %v3724_v44  ;;  %1854 = vmatprep.subr.bf16.mxu0 %v4182_v48  ;;  %v4199_v48 = vld [vmem:[#allocation23_spill] sm:$0xff] }
 0x419   :  { %1686 = vmatpush1.bf16.msra.mxu1 %v3728_v46  ;;  %1855 = vmatpush1.bf16.msra.mxu0 %v4183_v50  ;;  %v2359_v50 = vpack.c.bf16 %v1781_v35, %v1781_v35  ;;  %v4214_v35 = vld [vmem:[#allocation31_spill] sm:$0xff] }
 0x41a   :  { %1856 = vmatprep.subr.bf16.mxu0 %v4184_v0  ;;  %1887 = vmatprep.subr.bf16.mxu1 %v4185_v3  ;;  %v4201_v0 = vld [vmem:[#allocation70_spill] sm:$0xff]  ;;  %v4202_v3 = vld [vmem:[#allocation25_spill] sm:$0xff] }
 0x41c   :  { %2348 = vmatmul.mubr.msk.bf16.vlgmr.msra.gmra.mrb[8].mxu1 %vm3227_vm4, %v2347_v53  ;;  %v4200_v53 = vld [vmem:[#allocation24_spill] sm:$0xff] }
 0x41d   :  { %1857 = vmatpush1.bf16.msra.mxu0 %v4186_v14  ;;  %1888 = vmatpush1.bf16.msra.mxu1 %v4187_v62  ;;  %v4203_v14 = vld [vmem:[#allocation69_spill] sm:$0xff]  ;;  %v4205_v62 = vld [vmem:[#allocation71_spill] sm:$0xff] }
 0x41e   :  { %1858 = vmatprep.subr.bf16.mxu0 %v4188_v31  ;;  %1889 = vmatprep.subr.bf16.mxu1 %v4189_v11  ;;  %v4206_v31 = vld [vmem:[#allocation27_spill] sm:$0xff]  ;;  %v4207_v11 = vld [vmem:[#allocation72_spill] sm:$0xff] }
 0x421   :  { %1859 = vmatpush1.bf16.msra.mxu0 %v4190_v16  ;;  %1890 = vmatpush1.bf16.msra.mxu1 %v4191_v18  ;;  %v4208_v16 = vld [vmem:[#allocation28_spill] sm:$0xff]  ;;  %v4209_v18 = vld [vmem:[#allocation73_spill] sm:$0xff] }
 0x422   :  { %1860 = vmatprep.subr.bf16.mxu0 %v4192_v9  ;;  %1891 = vmatprep.subr.bf16.mxu1 %v4193_v28  ;;  %v4210_v9 = vld [vmem:[#allocation29_spill] sm:$0xff]  ;;  %v4211_v28 = vld [vmem:[#allocation74_spill] sm:$0xff] }
 0x425   :  { %1861 = vmatpush1.bf16.msra.mxu0 %v4194_v30  ;;  %1892 = vmatpush1.bf16.msra.mxu1 %v4195_v33  ;;  %v4212_v30 = vld [vmem:[#allocation30_spill] sm:$0xff]  ;;  %v4213_v33 = vld [vmem:[#allocation75_spill] sm:$0xff] }
 0x426   :  { %1862 = vmatprep.subr.bf16.mxu0 %v4196_v39  ;;  %1893 = vmatprep.subr.bf16.mxu1 %v4197_v45  ;;  %v4215_v39 = vld [vmem:[#allocation76_spill] sm:$0xff] }
 0x427   :  { %v4216_v45 = vld [vmem:[#allocation32_spill] sm:$0xff] }
 0x429   :  { %1863 = vmatpush1.bf16.msra.mxu0 %v4198_v47  ;;  %1894 = vmatpush1.bf16.msra.mxu1 %v4199_v48  ;;  %v4217_v47 = vld [vmem:[#allocation77_spill] sm:$0xff] }
 0x42a   :  { %1895 = vmatprep.subr.bf16.mxu1 %v4200_v53  ;;  %1983 = vmatprep.subr.bf16.mxu0 %v4201_v0  ;;  %v4218_v48 = vld [vmem:[#allocation33_spill] sm:$0xff]  ;;  %v4220_v53 = vld [vmem:[#allocation34_spill] sm:$0xff]  ;;  %v4221_v0 = vld [vmem:[#allocation79_spill] sm:$0xff] }
 0x42c   :  { %2360 = vmatmul.mubr.msk.bf16.vlgmr.msra.gmra.mrb[8].mxu0 %vm3227_vm4, %v2359_v50  ;;  %v4219_v50 = vld [vmem:[#allocation78_spill] sm:$0xff] }
 0x42d   :  { %1896 = vmatpush1.bf16.msra.mxu1 %v4202_v3  ;;  %1984 = vmatpush1.bf16.msra.mxu0 %v4203_v14  ;;  %v4222_v3 = vld [vmem:[#allocation35_spill] sm:$0xff]  ;;  %v4223_v14 = vld [vmem:[#allocation80_spill] sm:$0xff] }
 0x42e   :  { %1897 = vmatprep.subr.bf16.mxu1 %v4204_v55  ;;  %1985 = vmatprep.subr.bf16.mxu0 %v4205_v62  ;;  %v4224_v55 = vld [vmem:[#allocation36_spill] sm:$0xff]  ;;  %v4225_v62 = vld [vmem:[#allocation81_spill] sm:$0xff] }
 0x431   :  { %1898 = vmatpush1.bf16.msra.mxu1 %v4206_v31  ;;  %1986 = vmatpush1.bf16.msra.mxu0 %v4207_v11  ;;  %v4226_v31 = vld [vmem:[#allocation37_spill] sm:$0xff]  ;;  %v4227_v11 = vld [vmem:[#allocation82_spill] sm:$0xff] }
 0x432   :  { %1899 = vmatprep.subr.bf16.mxu1 %v4208_v16  ;;  %1987 = vmatprep.subr.bf16.mxu0 %v4209_v18  ;;  %v4228_v16 = vld [vmem:[#allocation38_spill] sm:$0xff]  ;;  %v4229_v18 = vld [vmem:[#allocation83_spill] sm:$0xff] }
 0x435   :  { %1900 = vmatpush1.bf16.msra.mxu1 %v4210_v9  ;;  %1988 = vmatpush1.bf16.msra.mxu0 %v4211_v28  ;;  %v4230_v9 = vld [vmem:[#allocation39_spill] sm:$0xff]  ;;  %v4231_v28 = vld [vmem:[#allocation84_spill] sm:$0xff] }
 0x436   :  { %1901 = vmatprep.subr.bf16.mxu1 %v4212_v30  ;;  %1989 = vmatprep.subr.bf16.mxu0 %v4213_v33  ;;  %v4232_v30 = vld [vmem:[#allocation40_spill] sm:$0xff]  ;;  %v4233_v33 = vld [vmem:[#allocation85_spill] sm:$0xff] }
 0x439   :  { %1902 = vmatpush1.bf16.msra.mxu1 %v4214_v35  ;;  %1990 = vmatpush1.bf16.msra.mxu0 %v4215_v39  ;;  %v4234_v35 = vld [vmem:[#allocation41_spill] sm:$0xff]  ;;  %v4235_v39 = vld [vmem:[#allocation86_spill] sm:$0xff] }
 0x43a   :  { %1903 = vmatprep.subr.bf16.mxu1 %v4216_v45  ;;  %1991 = vmatprep.subr.bf16.mxu0 %v4217_v47  ;;  %v4236_v45 = vld [vmem:[#allocation42_spill] sm:$0xff]  ;;  %v4237_v47 = vld [vmem:[#allocation87_spill] sm:$0xff] }
 0x43d   :  { %1904 = vmatpush1.bf16.msra.mxu1 %v4218_v48  ;;  %1992 = vmatpush1.bf16.msra.mxu0 %v4219_v50  ;;  %v4238_v48 = vld [vmem:[#allocation43_spill] sm:$0xff]  ;;  %v4239_v50 = vld [vmem:[#allocation88_spill] sm:$0xff] }
 0x43e   :  { %1905 = vmatprep.subr.bf16.mxu1 %v4220_v53  ;;  %1993 = vmatprep.subr.bf16.mxu0 %v4221_v0  ;;  %v4240_v53 = vld [vmem:[#allocation64_spill] sm:$0xff]  ;;  %v4241_v0 = vld [vmem:[#allocation90_spill] sm:$0xff] }
 0x441   :  { %1906 = vmatpush1.bf16.msra.mxu1 %v4222_v3  ;;  %1994 = vmatpush1.bf16.msra.mxu0 %v4223_v14  ;;  %v4242_v3 = vld [vmem:[#allocation65_spill] sm:$0xff]  ;;  %v4243_v14 = vld [vmem:[#allocation66_spill] sm:$0xff] }
 0x442   :  { %1907 = vmatprep.subr.bf16.mxu1 %v4224_v55  ;;  %1995 = vmatprep.subr.bf16.mxu0 %v4225_v62  ;;  %v4244_v55 = vld [vmem:[#allocation67_spill] sm:$0xff]  ;;  %v4245_v62 = vld [vmem:[#allocation68_spill] sm:$0xff] }
 0x445   :  { %1908 = vmatpush1.bf16.msra.mxu1 %v4226_v31  ;;  %1996 = vmatpush1.bf16.msra.mxu0 %v4227_v11  ;;  %v4246_v31 = vld [vmem:[#allocation92_spill] sm:$0xff]  ;;  %v4247_v11 = vld [vmem:[#allocation95_spill] sm:$0xff] }
 0x446   :  { %1909 = vmatprep.subr.bf16.mxu1 %v4228_v16  ;;  %1997 = vmatprep.subr.bf16.mxu0 %v4229_v18  ;;  %v4248_v16 = vld [vmem:[#allocation96_spill] sm:$0xff]  ;;  %v4249_v18 = vld [vmem:[#allocation99_spill] sm:$0xff] }
 0x449   :  { %1910 = vmatpush1.bf16.msra.mxu1 %v4230_v9  ;;  %1998 = vmatpush1.bf16.msra.mxu0 %v4231_v28 }
 0x44a   :  { %1911 = vmatprep.subr.bf16.mxu1 %v4232_v30  ;;  %1999 = vmatprep.subr.bf16.mxu0 %v4233_v33 }
 0x44d   :  { %1912 = vmatpush1.bf16.msra.mxu1 %v4234_v35  ;;  %2000 = vmatpush1.bf16.msra.mxu0 %v4235_v39 }
 0x44e   :  { %1913 = vmatprep.subr.bf16.mxu1 %v4236_v45  ;;  %2001 = vmatprep.subr.bf16.mxu0 %v4237_v47 }
 0x451   :  { %1914 = vmatpush1.bf16.msra.mxu1 %v4238_v48  ;;  %2002 = vmatpush1.bf16.msra.mxu0 %v4239_v50  ;;  %v4250_v50 = vld [vmem:[#allocation89_spill] sm:$0xff] }
 0x452   :  { %1915 = vmatprep.subr.bf16.mxu1 %v4240_v53  ;;  %2003 = vmatprep.subr.bf16.mxu0 %v4241_v0 }
 0x455   :  { %1916 = vmatpush1.bf16.msra.mxu1 %v4242_v3  ;;  %2004 = vmatpush1.bf16.msra.mxu0 %v3415_v52  ;;  %v1282_v52 = vld [vmem:[%s3940_s8] sm:$0x3]  ;;  %s2870_s8 = smov 1  }
 0x456   :  { %1917 = vmatprep.subr.bf16.mxu1 %v4243_v14  ;;  %2005 = vmatprep.subr.bf16.mxu0 %v3419_v63  ;;  %v3818_v63 = vrot.slane %v1282_v52, %v3199_v60  ;;  %v4251_v3 = vld [vmem:[#allocation91_spill] sm:$0xff] }
 0x459   :  { %1918 = vmatpush1.bf16.msra.mxu1 %v4244_v55  ;;  %2006 = vmatpush1.bf16.msra.mxu0 %v3425_v4  ;;  %v3823_v4 = vld [vmem:[%s3941_s9] sm:$0xff]  ;;  %s2871_s9 = smov [#allocation11]  }
 0x45a   :  { %1928 = vmatprep.subr.bf16.mxu1 %v4245_v62  ;;  %2007 = vmatprep.subr.bf16.mxu0 %v4246_v31  ;;  %v99_v9 = vunpack.c.h.bf16 %v3823_v4  ;;  %s2107_s1 = sshll.u32 %s2871_s9, 4  ;;  %s2108_s1 = int_to_ptr.vmem [resolvable:$true] %s2107_s1 }
 0x45b   :  { %s2832_s22 = scalar_lea.vmem %s2108_s1, 16  ;;  %s2836_s18 = scalar_lea.vmem %s2108_s1, 32 }
 0x45c   :  { %p2833_p4 = scmp.ne.s32.totalorder %s2108_s1, %s2832_s22  ;;  %p2837_p5 = scmp.lt.s32.totalorder %s2108_s1, %s2108_s1 }
 0x45d   :  { %2008 = vmatpush1.bf16.msra.mxu0 %v4247_v11  ;;  %p2838_p6 = scmp.lt.s32.totalorder %s2836_s18, %s2832_s22 }
 0x45e   :  { %2009 = vmatprep.subr.bf16.mxu0 %v4248_v16 }
 0x45f   :  { %p2839_p7 = por %p2838_p6, %p2837_p5 }
 0x461   :  { %2010 = vmatpush1.bf16.msra.mxu0 %v4249_v18  ;;  %p2840_p8 = pnand %p2839_p7, %p2833_p4 }
 0x462   :  { %2011 = vmatprep.subr.bf16.mxu0 %v3578_v17  ;;  %v3826_v17 = vrot.slane %v1282_v52, %v3207_v12 }
 0x465   :  { %2012 = vmatpush1.bf16.msra.mxu0 %v3580_v19 }
 0x466   :  { %2013 = vmatprep.subr.bf16.mxu0 %v3584_v20  ;;  %v98_v20 = vunpack.c.l.bf16 %v3823_v4 }
 0x469   :  { %2014 = vmatpush1.bf16.msra.mxu0 %v3586_v21 }
 0x46a   :  { %2024 = vmatprep.subr.bf16.mxu0 %v3590_v22 }
 0x4ef   :  { %v1689_v19 = vpop.f32.mrb[8].mxu1 }
 0x4f0   :  { %v2385_v21 = vadd.f32 %v1689_v19, %v3818_v63  ;;  %v1691_v22 = vpop.f32.mrb[9].mxu1 }
 0x4f1   :  { %v2386_v28 = vadd.f32 %v1691_v22, %v3826_v17  ;;  %v1693_v30 = vpop.f32.mrb[10].mxu1  ;;  %v4253_v22 = vld [vmem:[#allocation94_spill] sm:$0xff] }
 0x4f2   :  { %v1696_v33 = vmax.f32 %v2385_v21, 0.0  ;;  %v1694_v35 = vpop.f32.mrb[11].mxu1  ;;  %v4252_v21 = vld [vmem:[#allocation93_spill] sm:$0xff]  ;;  %v4255_v30 = vld [vmem:[#allocation98_spill] sm:$0xff] }
 0x4f3   :  { %v1697_v39 = vmax.f32 %v2386_v28, 0.0  ;;  %v4254_v28 = vld [vmem:[#allocation97_spill] sm:$0xff] }
 0x4f4   :  { %v1698_v45 = vmul.f32 %v1696_v33, %v98_v20  ;;  %v4256_v33 = vld [vmem:[#allocation100_spill] sm:$0xff]  ;;  %v4257_v35 = vld [vmem:[#allocation101_spill] sm:$0xff] }
 0x4f5   :  { %v1699_v12 = vmul.f32 %v1697_v39, %v99_v9  ;;  %v4258_v39 = vld [vmem:[#allocation102_spill] sm:$0xff] }
 0x4f7   :  { %v3836_v47 = vadd.f32 %v1699_v12, %v1698_v45  ;;  %v4259_v45 = vld [vmem:[#allocation103_spill] sm:$0xff]  ;;  %v4260_v12 = vld [vmem:[#allocation104_spill] sm:$0xff] }
 0x4ff   :  { %v1866_v48 = vpop.f32.mrb[8].mxu0 }
 0x500   :  { %v2387_v53 = vadd.f32 %v1866_v48, %v4250_v50  ;;  %v1868_v0 = vpop.f32.mrb[9].mxu0  ;;  %v4261_v48 = vld [vmem:[#allocation105_spill] sm:$0xff]  ;;  %v4262_v50 = vld [vmem:[#allocation106_spill] sm:$0xff] }
 0x501   :  { %v2388_v14 = vadd.f32 %v1868_v0, %v4251_v3  ;;  %v1870_v55 = vpop.f32.mrb[10].mxu0  ;;  %v4264_v0 = vld [vmem:[#allocation108_spill] sm:$0xff]  ;;  %v4265_v3 = vld [vmem:[#allocation109_spill] sm:$0xff] }
 0x502   :  { %v1873_v62 = vmax.f32 %v2387_v53, 0.0  ;;  %v1871_v31 = vpop.f32.mrb[11].mxu0  ;;  %v4263_v53 = vld [vmem:[#allocation107_spill] sm:$0xff] }
 0x503   :  { %v1874_v11 = vmax.f32 %v2388_v14, 0.0  ;;  %v4266_v14 = vld [vmem:[#allocation110_spill] sm:$0xff]  ;;  %v4267_v55 = vld [vmem:[#allocation111_spill] sm:$0xff]  ;;  %v4268_v31 = vld [vmem:[#allocation112_spill] sm:$0xff] }
 0x504   :  { %v1883_v52 = vpack.c.bf16 %v1873_v62, %v1873_v62 }
 0x505   :  { %v1878_v16 = vrot.slane %v1874_v11, 7  ;;  %v1884_v18 = vpack.c.bf16 %v1874_v11, %v1874_v11  ;;  %v4269_v11 = vld [vmem:[#allocation113_spill] sm:$0xff] }
 0x507   :  { %v2364_v19 = vpack.c.bf16 %v1878_v16, %v1878_v16  ;;  %1919 = vmatprep.mubr.bf16.mxu1 %v1884_v18  ;;  %v4270_v16 = vld [vmem:[#allocation114_spill] sm:$0xff]  ;;  %v4271_v18 = vld [vmem:[#allocation115_spill] sm:$0xff] }
 0x508   :  { %1920 = vmatmul.mubr.bf16.vlgmr.msra.gmra.mrb[12].mxu1 %v1883_v52  ;;  %v4272_v52 = vld [vmem:[#allocation116_spill] sm:$0xff] }
 0x509   :  { %1929 = vmatpush1.bf16.msra.mxu1 %v4252_v21  ;;  %2365 = vmatprep.mubr.msk.bf16.mxu1 %vm3227_vm4, %v2364_v19  ;;  %v4273_v19 = vld [vmem:[#allocation117_spill] sm:$0xff]  ;;  %v4274_v21 = vld [vmem:[#allocation118_spill] sm:$0xff] }
 0x50a   :  { %1930 = vmatprep.subr.bf16.mxu1 %v4253_v22  ;;  %v4275_v22 = vld [vmem:[#allocation119_spill] sm:$0xff] }
 0x50d   :  { %1931 = vmatpush1.bf16.msra.mxu1 %v4254_v28  ;;  %v4276_v28 = vld [vmem:[#allocation120_spill] sm:$0xff] }
 0x50e   :  { %1932 = vmatprep.subr.bf16.mxu1 %v4255_v30  ;;  %v4277_v30 = vld [vmem:[#allocation121_spill] sm:$0xff] }
 0x511   :  { %1933 = vmatpush1.bf16.msra.mxu1 %v4256_v33  ;;  %v4278_v33 = vld [vmem:[#allocation122_spill] sm:$0xff] }
 0x512   :  { %1934 = vmatprep.subr.bf16.mxu1 %v4257_v35  ;;  %v4279_v35 = vld [vmem:[#allocation123_spill] sm:$0xff] }
 0x515   :  { %1935 = vmatpush1.bf16.msra.mxu1 %v4258_v39  ;;  %v4280_v39 = vld [vmem:[#allocation124_spill] sm:$0xff] }
 0x516   :  { %1936 = vmatprep.subr.bf16.mxu1 %v4259_v45  ;;  %v1877_v45 = vrot.slane %v1873_v62, 7 }
 0x519   :  { %1937 = vmatpush1.bf16.msra.mxu1 %v4260_v12  ;;  %v4281_v12 = vld [vmem:[#allocation125_spill] sm:$0xff] }
 0x51a   :  { %1938 = vmatprep.subr.bf16.mxu1 %v4261_v48  ;;  %v4282_v48 = vld [vmem:[#allocation126_spill] sm:$0xff] }
 0x51d   :  { %1939 = vmatpush1.bf16.msra.mxu1 %v4262_v50  ;;  %v2369_v50 = vpack.c.bf16 %v1877_v45, %v1877_v45 }
 0x51e   :  { %1940 = vmatprep.subr.bf16.mxu1 %v4263_v53 }
 0x521   :  { %1941 = vmatpush1.bf16.msra.mxu1 %v4264_v0 }
 0x522   :  { %1942 = vmatprep.subr.bf16.mxu1 %v4265_v3 }
 0x525   :  { %1943 = vmatpush1.bf16.msra.mxu1 %v4266_v14 }
 0x526   :  { %1944 = vmatprep.subr.bf16.mxu1 %v4267_v55 }
 0x529   :  { %1945 = vmatpush1.bf16.msra.mxu1 %v4268_v31 }
 0x52a   :  { %1946 = vmatprep.subr.bf16.mxu1 %v4269_v11 }
 0x52d   :  { %1947 = vmatpush1.bf16.msra.mxu1 %v4270_v16 }
 0x52e   :  { %1948 = vmatprep.subr.bf16.mxu1 %v4271_v18 }
 0x531   :  { %1949 = vmatpush1.bf16.msra.mxu1 %v4272_v52 }
 0x532   :  { %1950 = vmatprep.subr.bf16.mxu1 %v4273_v19 }
 0x535   :  { %1951 = vmatpush1.bf16.msra.mxu1 %v4274_v21 }
 0x536   :  { %1952 = vmatprep.subr.bf16.mxu1 %v4275_v22 }
 0x539   :  { %1953 = vmatpush1.bf16.msra.mxu1 %v4276_v28 }
 0x53a   :  { %1954 = vmatprep.subr.bf16.mxu1 %v4277_v30 }
 0x53d   :  { %1955 = vmatpush1.bf16.msra.mxu1 %v4278_v33 }
 0x53e   :  { %1956 = vmatprep.subr.bf16.mxu1 %v4279_v35 }
 0x541   :  { %1957 = vmatpush1.bf16.msra.mxu1 %v4280_v39 }
 0x542   :  { %1958 = vmatprep.subr.bf16.mxu1 %v4281_v12 }
 0x545   :  { %1959 = vmatpush1.bf16.msra.mxu1 %v4282_v48 }
 0x548   :  { %2370 = vmatmul.mubr.msk.bf16.vlgmr.msra.gmra.mrb[12].mxu1 %vm3227_vm4, %v2369_v50 }
 0x61b   :  { %v1962_v53 = vpop.f32.mrb[12].mxu1 }
 0x61c   :  { %v2389_v0 = vadd.f32 %v1962_v53, %v3597_v24  ;;  %v1964_v3 = vpop.f32.mrb[13].mxu1 }
 0x61d   :  { %v2390_v14 = vadd.f32 %v1964_v3, %v3600_v25  ;;  %v1966_v55 = vpop.f32.mrb[14].mxu1 }
 0x61e   :  { %v1969_v31 = vmax.f32 %v2389_v0, 0.0  ;;  %v1967_v11 = vpop.f32.mrb[15].mxu1 }
 0x61f   :  { %v1970_v16 = vmax.f32 %v2390_v14, 0.0 }
 0x620   :  { %v1979_v52 = vpack.c.bf16 %v1969_v31, %v1969_v31  ;;  %v1973_v24 = vrot.slane %v1969_v31, 7 }
 0x621   :  { %v1974_v18 = vrot.slane %v1970_v16, 7  ;;  %v1980_v62 = vpack.c.bf16 %v1970_v16, %v1970_v16 }
 0x622   :  { %v2379_v25 = vpack.c.bf16 %v1973_v24, %v1973_v24 }
 0x623   :  { %v2374_v19 = vpack.c.bf16 %v1974_v18, %v1974_v18  ;;  %2015 = vmatprep.mubr.bf16.mxu0 %v1980_v62 }
 0x624   :  { %2016 = vmatmul.mubr.bf16.vlgmr.msra.gmra.mrb[12].mxu0 %v1979_v52 }
 0x625   :  { %2025 = vmatpush1.bf16.msra.mxu0 %v3606_v36  ;;  %2375 = vmatprep.mubr.msk.bf16.mxu0 %vm3227_vm4, %v2374_v19 }
 0x626   :  { %2026 = vmatprep.subr.bf16.mxu0 %v3610_v38 }
 0x629   :  { %2027 = vmatpush1.bf16.msra.mxu0 %v3615_v40 }
 0x62a   :  { %2028 = vmatprep.subr.bf16.mxu0 %v3618_v41 }
 0x62d   :  { %2029 = vmatpush1.bf16.msra.mxu0 %v3621_v42 }
 0x62e   :  { %2030 = vmatprep.subr.bf16.mxu0 %v3624_v43 }
 0x631   :  { %2031 = vmatpush1.bf16.msra.mxu0 %v3629_v49 }
 0x632   :  { %2032 = vmatprep.subr.bf16.mxu0 %v3634_v58 }
 0x635   :  { %2033 = vmatpush1.bf16.msra.mxu0 %v3637_v15 }
 0x636   :  { %2034 = vmatprep.subr.bf16.mxu0 %v3642_v54 }
 0x639   :  { %2035 = vmatpush1.bf16.msra.mxu0 %v3646_v2 }
 0x63a   :  { %2036 = vmatprep.subr.bf16.mxu0 %v3651_v51 }
 0x63d   :  { %2037 = vmatpush1.bf16.msra.mxu0 %v3656_v57 }
 0x63e   :  { %2038 = vmatprep.subr.bf16.mxu0 %v3660_v5 }
 0x641   :  { %2039 = vmatpush1.bf16.msra.mxu0 %v3664_v61 }
 0x642   :  { %2040 = vmatprep.subr.bf16.mxu0 %v3668_v13 }
 0x645   :  { %2041 = vmatpush1.bf16.msra.mxu0 %v3672_v7  ;;  %v100_v7 = vld [vmem:[#allocation2] sm:$0x1] }
 0x646   :  { %2042 = vmatprep.subr.bf16.mxu0 %v3676_v8 }
 0x649   :  { %2043 = vmatpush1.bf16.msra.mxu0 %v3680_v10 }
 0x64a   :  { %2044 = vmatprep.subr.bf16.mxu0 %v3684_v6 }
 0x64d   :  { %2045 = vmatpush1.bf16.msra.mxu0 %v3688_v56 }
 0x64e   :  { %2046 = vmatprep.subr.bf16.mxu0 %v3692_v59 }
 0x651   :  { %2047 = vmatpush1.bf16.msra.mxu0 %v3696_v23 }
 0x652   :  { %2048 = vmatprep.subr.bf16.mxu0 %v3700_v26 }
 0x655   :  { %2049 = vmatpush1.bf16.msra.mxu0 %v3704_v27 }
 0x656   :  { %2050 = vmatprep.subr.bf16.mxu0 %v3708_v29 }
 0x659   :  { %2051 = vmatpush1.bf16.msra.mxu0 %v3712_v32 }
 0x65a   :  { %2052 = vmatprep.subr.bf16.mxu0 %v3716_v34 }
 0x65d   :  { %2053 = vmatpush1.bf16.msra.mxu0 %v3720_v37 }
 0x65e   :  { %2054 = vmatprep.subr.bf16.mxu0 %v3724_v44 }
 0x661   :  { %2055 = vmatpush1.bf16.msra.mxu0 %v3728_v46 }
 0x664   :  { %2380 = vmatmul.mubr.msk.bf16.vlgmr.msra.gmra.mrb[12].mxu0 %vm3227_vm4, %v2379_v25 }
 0x737   :  { %v2058_v36 = vpop.f32.mrb[12].mxu0 }
 0x738   :  { %v2391_v38 = vadd.f32 %v2058_v36, %v3818_v63  ;;  %v2060_v40 = vpop.f32.mrb[13].mxu0 }
 0x739   :  { %v2392_v41 = vadd.f32 %v2060_v40, %v3826_v17  ;;  %v2062_v42 = vpop.f32.mrb[14].mxu0 }
 0x73a   :  { %v2065_v43 = vmax.f32 %v2391_v38, 0.0  ;;  %v2063_v49 = vpop.f32.mrb[15].mxu0 }
 0x73b   :  { %v2066_v58 = vmax.f32 %v2392_v41, 0.0 }
 0x73c   :  { %v2067_v15 = vmul.f32 %v2065_v43, %v98_v20 }
 0x73d   :  { %v2068_v54 = vmul.f32 %v2066_v58, %v99_v9 }
 0x73f   :  { %v2069_v2 = vadd.f32 %v2068_v54, %v2067_v15 }
 0x741   :  { %2070 = vadd.xlane.f32.xlu1 %v2069_v2 }
 0x745   :  { %1701 = vadd.xlane.f32.xlu1 %v3836_v47 }
 0x7ce   :  { %v2071_v1 = vpop.xlane.xlu1 %2070 }
 0x7cf   :  { %v2072_v51 = vrot.slane %v2071_v1, 4 }
 0x7d1   :  { %v2073_v57 = vadd.f32 %v2072_v51, %v2071_v1 }
 0x7d2   :  { %v1702_v37 = vpop.xlane.xlu1 %1701 }
 0x7d3   :  { %v2074_v5 = vrot.slane %v2073_v57, 2  ;;  %v1703_v44 = vrot.slane %v1702_v37, 4 }
 0x7d5   :  { %v2075_v61 = vadd.f32 %v2074_v5, %v2073_v57  ;;  %v1704_v46 = vadd.f32 %v1703_v44, %v1702_v37 }
 0x7d7   :  { %v2076_v13 = vrot.slane %v2075_v61, 1  ;;  %v1705_v63 = vrot.slane %v1704_v46, 2 }
 0x7d9   :  { %v2077_v8 = vadd.f32 %v2076_v13, %v2075_v61  ;;  %v1706_v4 = vadd.f32 %v1705_v63, %v1704_v46 }
 0x7db   :  { %v2078_v10 = vadd.f32 %v2077_v8, %v100_v7  ;;  %v1707_v17 = vrot.slane %v1706_v4, 1 }
 0x7dd   :  { %v2079_v6 = vand.u32 2147483647, %v2078_v10  ;;  %vm2083_vm5 = vcmp.ge.f32.partialorder %v2078_v10, 0.0  ;;  %v1708_v20 = vadd.f32 %v1707_v17, %v1706_v4 }
 0x7df   :  { %v2080_v56 = vsub.f32 0.0, %v2079_v6  ;;  %v1709_v9 = vadd.f32 %v1708_v20, %v100_v7 }
 0x7e1   :  { %v2081_v59 = vmul.f32 1.442695, %v2080_v56  ;;  %v1710_v47 = vand.u32 2147483647, %v1709_v9  ;;  %vm1714_vm7 = vcmp.ge.f32.partialorder %v1709_v9, 0.0 }
 0x7e3   :  { %2727 = vpow2.f32 %v2081_v59  ;;  %v1711_v21 = vsub.f32 0.0, %v1710_v47 }
 0x7e5   :  { %v1712_v22 = vmul.f32 1.442695, %v1711_v21 }
 0x7ed   :  { %v2728_v23 = vpop.eup %2727 }
 0x7ee   :  { %v2084_v26 = vadd.f32 1.0, %v2728_v23 }
 0x7f0   :  { %2729 = vrcp.f32 %v2084_v26 }
 0x7f1   :  { %2731 = vpow2.f32 %v1712_v22 }
 0x7fa   :  { %v2730_v27 = vpop.eup %2729 }
 0x7fb   :  { %v2087_v29 = vmul.f32 %v2730_v27, %v2728_v23  ;;  %v2732_v28 = vpop.eup %2731 }
 0x7fc   :  { %v1715_v30 = vadd.f32 1.0, %v2732_v28 }
 0x7fd   :  { %v2088_v32 = vsel %vm2083_vm5, %v2730_v27, %v2087_v29 }
 0x7fe   :  { %v2093_v34 = vrot.slane %v2088_v32, %v3199_v60  ;;  %2733 = vrcp.f32 %v1715_v30 }
 0x800   :  { %2094 = vrot.lane.b32.xlu0 %v2093_v34, %s2870_s8 }
 0x808   :  { %v2734_v33 = vpop.eup %2733 }
 0x809   :  { %v1718_v35 = vmul.f32 %v2734_v33, %v2732_v28 }
 0x80b   :  { %v1719_v39 = vsel %vm1714_vm7, %v2734_v33, %v1718_v35 }
 0x872   :  { %v2095_v60 = vpop.permute.xlu0 %2094 }
 0x873   :  { %v2098_v45 = vsel %vm2097_vm6, %v1719_v39, %v2095_v60 }
 0x874   :  { %2100 = vst.msk [vmem:[#allocation11] sm:$0x1] %vm2099_vm8, %v2098_v45 }
 0x875   :  { %2843 = shalt.err (!%p2840_p8)
}
 0x876   :  { %s2844_s23 = scalar_lea.hbm %s3943_s11, 16 }
 0x877   :  { %p2845_p9 = scmp.ne.s32.totalorder %s3943_s11, %s2844_s23  ;;  %p2848_p10 = scmp.lt.u32.totalorder %s2844_s23, %s3943_s11 }
 0x879   :  { %p2850_p11 = pnand %p2848_p10, %p2845_p9 }
 0x87b   :  { %2853 = shalt.err (!%p2850_p11)
}
 0x87c   :  { %2110 = dma.vmem_to_hbm [thread:$0]  %s2108_s1, 16, %s3943_s11, [#allocation5]  }
 0x87d   :  { %2860 = dma.done.wait [#allocation5], 16  }
 0x87e   :  { %2861 = vsyncadd [#allocation5], 4294967280 }
 0x87f   :  { %2114 = vsyncpa [#allocation4], 1 }
 0x880   :  { %2115 = vsyncpa [#allocation7], 1 }
 0x881   :  { %2116 = vsyncpa [#allocation10], 1 }
 0x882   :  { %2117 = vsyncpa [#allocation5], 1 }

</bundles_post_ra>
